<compile_context>
chip_gen: v7x
topology: tpu7x:2x2x1
jax: 0.10.0
libtpu: 0.0.40
codegen_flags: <defaults>
</compile_context>

<pallas_src>
import functools
import math

import jax
import jax.numpy as jnp
from jax.experimental import pallas as pl
from jax.experimental.pallas import tpu as pltpu


# ----------------------------------------------------------------------------
# calculate_theta2 without sympy/scipy: ascending-order coefficients of
#   (x/2)^i * (1 - x/2)^(d-i) / Beta(i+1, d+1-i)        for i = 0..d
# ----------------------------------------------------------------------------
def calculate_theta2(d):
    thetas = []
    for i in range(d + 1):
        beta = math.factorial(i) * math.factorial(d - i) / math.factorial(d + 1)
        coeffs = [0.0] * (d + 1)
        for j in range(d - i + 1):
            coeffs[i + j] = math.comb(d - i, j) * ((-0.5) ** j) * (0.5 ** i) / beta
        thetas.append([float(c) for c in coeffs])
    return thetas


def _round_up(x, m):
    return (x + m - 1) // m * m


def _fold_head_weights(params, thetas):
    """Fold theta mixing + linear3/linear4 into three (H, 2H) matrices + one bias.

    out = relu( h @ W[0] + (L h) @ W[1] + (L^2 h) @ W[2] + b ), with
    out[:, :H] == h_l and out[:, H:] == h_h of the reference module.
    """
    th = [[float(c) for c in t] for t in thetas]
    ws = []
    for k in range(len(th[0])):
        w_low = th[0][k] * params["w3"]                                # linear3 (low-pass)
        w_high = th[1][k] * params["w4a"] + th[2][k] * params["w4b"]   # linear4 (high-pass)
        ws.append(jnp.concatenate([w_low, w_high], axis=1).astype(jnp.float32))
    b = jnp.concatenate([params["b3"], params["b4"]], axis=1).astype(jnp.float32)
    return ws, b


# ----------------------------------------------------------------------------
# Fused BWGNN kernel: grid = (phase, node-row block).
#   phase 0: h = MLP(x) rows; stash [h | 0] (f32) and D^-1/2 h (bf16)
#   phase 1: feat1 = L h rows; stash [h | feat1] and D^-1/2 feat1 (bf16)
#   phase 2: feat2 = L feat1 rows; both heads as one lane-dense (tm, OUT) slab
# ----------------------------------------------------------------------------
def bwgnn_kernel(x_ref, a_ref, dinv_ref, w1_ref, b1_ref, w2_ref, b2_ref,
                 wh01_ref, wh2_ref, bh_ref,
                 out_ref,
                 hf_buf, hs_buf, f1s_buf, *, tm, h_feats):
    f32, bf16 = jnp.float32, jnp.bfloat16
    phase = pl.program_id(0)
    i = pl.program_id(1)
    rows = pl.ds(pl.multiple_of(i * tm, tm), tm)
    dinv = dinv_ref[...]                                   # (tm, 1) f32, precomputed

    @pl.when(phase == 0)
    def _():
        # h = ReLU(ReLU(x @ W1 + b1) @ W2 + b2)  -- row-local, bf16 MXU operands.
        x = x_ref[...].astype(bf16)
        h = jnp.maximum(
            jnp.dot(x, w1_ref[...].astype(bf16), preferred_element_type=f32)
            + b1_ref[...], 0.0)
        h = jnp.maximum(
            jnp.dot(h.astype(bf16), w2_ref[...].astype(bf16),
                    preferred_element_type=f32) + b2_ref[...], 0.0)
        hf_buf[rows, :] = jnp.concatenate([h, jnp.zeros_like(h)], axis=-1)
        hs_buf[rows, :] = (h * dinv).astype(bf16)          # D^-1/2 h (matmul operand)

    @pl.when(phase == 1)
    def _():
        # feat1 = h - D^-1/2 A D^-1/2 h   (rows of this block vs. full scaled h)
        a = a_ref[...].astype(bf16)                        # int8 {0,1} -> bf16, exact
        agg = jnp.dot(a, hs_buf[...], preferred_element_type=f32)
        h = hf_buf[rows, :][:, :h_feats]
        f1 = h - agg * dinv
        hf_buf[rows, :] = jnp.concatenate([h, f1], axis=-1)
        f1s_buf[rows, :] = (f1 * dinv).astype(bf16)

    @pl.when(phase == 2)
    def _():
        # feat2 = L feat1, then both heads via folded, lane-padded weights.
        a = a_ref[...].astype(bf16)
        agg = jnp.dot(a, f1s_buf[...], preferred_element_type=f32)
        hf = hf_buf[rows, :]                               # [h | feat1]
        f2 = hf[:, h_feats:] - agg * dinv
        out = (jnp.dot(hf, wh01_ref[...], preferred_element_type=f32)
               + jnp.dot(f2, wh2_ref[...], preferred_element_type=f32)
               + bh_ref[...])
        out_ref[...] = jnp.maximum(out, 0.0)


def bwgnn_forward(x, A, params, thetas, *, row_tile=None):
    if len(thetas) != 3 or any(len(t) != 3 for t in thetas):
        # TODO(synk): general d needs (d+1) propagation phases; d=2 (module default) implemented.
        raise NotImplementedError("fused kernel implements the BWGNN default d=2")

    N, F = x.shape
    H = params["w2"].shape[1]
    outp = _round_up(2 * H, 128)       # lane-dense output slab width

    # Fold theta mixing + linear3/linear4, zero-pad to `outp` lanes, and
    # pre-concatenate the h / feat1 halves so the phase-2 head is two matmuls.
    wh, bh = _fold_head_weights(params, thetas)
    pad = ((0, 0), (0, outp - 2 * H))
    wh01 = jnp.concatenate([jnp.pad(wh[0], pad), jnp.pad(wh[1], pad)], axis=0)
    wh2 = jnp.pad(wh[2], pad)
    bhp = jnp.pad(bh, pad)

    # D^-1/2 once, in the wrapper (in-degree = row sum of A), clamp(min=1).
    deg = jnp.sum(A.astype(jnp.float32), axis=-1, keepdims=True)
    dinv = jnp.power(jnp.maximum(deg, 1.0), -0.5).astype(jnp.float32)

    # Generation-aware VMEM budget (v5e/v6e: 128 MiB physical, v7x: 64 MiB).
    try:
        vmem_cap = int(pltpu.get_tpu_info().vmem_capacity_bytes)
    except Exception:
        vmem_cap = 64 << 20            # conservative fallback: v7x-class per-core VMEM
    budget = int(vmem_cap * 0.7)

    def lanes(c):
        return _round_up(max(c, 1), 128)

    def vmem_estimate(tm, npad):
        scratch = npad * (lanes(2 * H) * 4 + 2 * lanes(H) * 2)   # hf + hs + f1s (lane-padded)
        blocks = (2 * tm * npad                     # A int8 double-buffer
                  + tm * npad * 2                   # bf16 upcast temp at the dot
                  + 2 * tm * lanes(F) * 4           # x double-buffer
                  + 2 * tm * lanes(outp) * 4        # out double-buffer
                  + 2 * tm * lanes(1) * 4)          # dinv double-buffer
        weights = 4 * (lanes(H) * (F + H + 2) + lanes(outp) * (3 * H + 1))
        return scratch + blocks + weights

    if row_tile is None:
        tm = 128
        for cand in (1024, 512, 256):
            if cand <= _round_up(N, 128) and vmem_estimate(cand, _round_up(N, cand)) <= budget:
                tm = cand
                break
    else:
        tm = row_tile
    assert tm % 128 == 0, "row tile must be a multiple of 128"
    npad = _round_up(N, tm)
    # TODO(synk): very large graphs need a K (column) grid axis for A and/or hs/f1s
    # spilled to HBM; the resident (tm, npad) strip stops fitting first on v7x.
    vmem_limit = int(min(vmem_cap * 0.9,
                         max(vmem_estimate(tm, npad) + (8 << 20), 32 << 20)))

    # Zero-pad: padded A columns are 0, so padded nodes never pollute real rows;
    # padded dinv is 1; padded output rows are sliced off below.
    xp = jnp.pad(x.astype(jnp.float32), ((0, npad - N), (0, 0)))
    ap = jnp.pad(A, ((0, npad - N), (0, npad - N))).astype(jnp.int8)
    dinvp = jnp.pad(dinv, ((0, npad - N), (0, 0)), constant_values=1.0)

    # Phase-gated index maps: A streamed only in phases 1/2 (2 passes total),
    # x only in phase 0, output blocks only visited/written back in phase 2.
    x_map = lambda s, i: (jnp.where(s == 0, i, 0), 0)
    a_map = lambda s, i: (jnp.where(s == 0, 0, i), 0)
    out_map = lambda s, i: (jnp.where(s == 2, i, 0), 0)
    row_map = lambda s, i: (i, 0)
    rep_map = lambda s, i: (0, 0)

    out = pl.pallas_call(
        functools.partial(bwgnn_kernel, tm=tm, h_feats=H),
        out_shape=jax.ShapeDtypeStruct((npad, outp), jnp.float32),
        grid=(3, npad // tm),
        in_specs=[
            pl.BlockSpec((tm, F), x_map),           # x rows            (phase 0 only)
            pl.BlockSpec((tm, npad), a_map),        # A rows, int8      (phases 1/2)
            pl.BlockSpec((tm, 1), row_map),         # D^-1/2 rows
            pl.BlockSpec((F, H), rep_map),          # w1
            pl.BlockSpec((1, H), rep_map),          # b1
            pl.BlockSpec((H, H), rep_map),          # w2
            pl.BlockSpec((1, H), rep_map),          # b2
            pl.BlockSpec((2 * H, outp), rep_map),   # folded head weight for [h | feat1]
            pl.BlockSpec((H, outp), rep_map),       # folded head weight for feat2
            pl.BlockSpec((1, outp), rep_map),       # folded head bias
        ],
        out_specs=pl.BlockSpec((tm, outp), out_map),
        scratch_shapes=[
            pltpu.VMEM((npad, 2 * H), jnp.float32),   # [h | feat1]
            pltpu.VMEM((npad, H), jnp.bfloat16),      # D^-1/2 h      (matmul operand)
            pltpu.VMEM((npad, H), jnp.bfloat16),      # D^-1/2 feat1  (matmul operand)
        ],
        compiler_params=pltpu.CompilerParams(
            # Both axes sequential: phases form a dependency chain and every row
            # block of phase p feeds phase p+1 through per-core VMEM scratch.
            # TODO(synk): v7x 2-TC sharding of the row axis needs the cross-phase
            # buffers in VMEM_SHARED (or three pallas_calls with HBM handoff).
            dimension_semantics=("arbitrary", "arbitrary"),
            vmem_limit_bytes=vmem_limit),
    )(xp, ap, dinvp, params["w1"], params["b1"], params["w2"], params["b2"],
      wh01, wh2, bhp)

    return out[:N, :H], out[:N, H:2 * H]


# ----------------------------------------------------------------------------
# References for verification.
# ----------------------------------------------------------------------------
def bwgnn_reference(x, A, params, thetas):
    """Faithful f32 mirror of the PyTorch forward."""
    deg = jnp.sum(A, axis=-1, keepdims=True)
    dinv = jnp.power(jnp.maximum(deg, 1.0), -0.5)
    h = jnp.maximum(x @ params["w1"] + params["b1"], 0.0)
    h = jnp.maximum(h @ params["w2"] + params["b2"], 0.0)

    def poly(theta, h):
        res = theta[0] * h
        feat = h
        for k in range(1, len(theta)):
            feat = feat - (A @ (feat * dinv)) * dinv
            res = res + theta[k] * feat
        return res

    h0 = poly(thetas[0], h)
    h1 = poly(thetas[1], h)
    h2 = poly(thetas[2], h)
    hl = jnp.maximum(h0 @ params["w3"] + params["b3"], 0.0)
    hh = jnp.maximum(jnp.concatenate([h1, h2], -1)
                     @ jnp.concatenate([params["w4a"], params["w4b"]], 0)
                     + params["b4"], 0.0)
    return hl, hh


def bwgnn_matched_reference(x, A, params, thetas):
    """Mirror of the kernel's numerics (bf16 MLP/propagation operands, folded heads)."""
    f32, bf16 = jnp.float32, jnp.bfloat16
    deg = jnp.sum(A, axis=-1, keepdims=True)
    dinv = jnp.power(jnp.maximum(deg, 1.0), -0.5)
    h = jnp.maximum(
        jnp.dot(x.astype(bf16), params["w1"].astype(bf16),
                preferred_element_type=f32) + params["b1"], 0.0)
    h = jnp.maximum(
        jnp.dot(h.astype(bf16), params["w2"].astype(bf16),
                preferred_element_type=f32) + params["b2"], 0.0)

    ab = A.astype(bf16)

    def prop(f):
        agg = jnp.dot(ab, (f * dinv).astype(bf16), preferred_element_type=f32)
        return f - agg * dinv

    f1 = prop(h)
    f2 = prop(f1)
    wh, bh = _fold_head_weights(params, thetas)
    out = jnp.maximum(h @ wh[0] + f1 @ wh[1] + f2 @ wh[2] + bh, 0.0)
    H = params["w2"].shape[1]
    return out[:, :H], out[:, H:]


if __name__ == "__main__":
    # Small shapes: N nodes (deliberately not a tile multiple to exercise padding),
    # in_feats, h_feats; d=2 -> 3 PolyConvs.
    N, IN_FEATS, H_FEATS, D = 250, 16, 32, 2
    thetas = calculate_theta2(D)

    key = jax.random.PRNGKey(0)
    kx, ka, k1, k2, k3, k4a, k4b, kb = jax.random.split(key, 8)

    # Node features.
    x = jax.random.normal(kx, (N, IN_FEATS), dtype=jnp.float32)

    # Deterministic synthetic symmetric graph (dense 0/1 adjacency, no self-loops).
    A = (jax.random.uniform(ka, (N, N)) < 0.05).astype(jnp.float32)
    A = jnp.maximum(A, A.T) * (1.0 - jnp.eye(N, dtype=jnp.float32))

    # Deterministic parameters (nn.Linear weights stored transposed: (in, out)).
    s = 0.1
    bkeys = jax.random.split(kb, 4)
    params = {
        "w1":  s * jax.random.normal(k1,  (IN_FEATS, H_FEATS), dtype=jnp.float32),
        "b1":  s * jax.random.normal(bkeys[0], (1, H_FEATS), dtype=jnp.float32),
        "w2":  s * jax.random.normal(k2,  (H_FEATS, H_FEATS), dtype=jnp.float32),
        "b2":  s * jax.random.normal(bkeys[1], (1, H_FEATS), dtype=jnp.float32),
        "w3":  s * jax.random.normal(k3,  (H_FEATS, H_FEATS), dtype=jnp.float32),
        "b3":  s * jax.random.normal(bkeys[2], (1, H_FEATS), dtype=jnp.float32),
        # linear4 has in_features = 2*H; split into two (H, H) halves.
        "w4a": s * jax.random.normal(k4a, (H_FEATS, H_FEATS), dtype=jnp.float32),
        "w4b": s * jax.random.normal(k4b, (H_FEATS, H_FEATS), dtype=jnp.float32),
        "b4":  s * jax.random.normal(bkeys[3], (1, H_FEATS), dtype=jnp.float32),
    }

    m_l, m_h = bwgnn_matched_reference(x, A, params, thetas)
    r_l, r_h = bwgnn_reference(x, A, params, thetas)

    # row_tile=128 -> grid = (3 phases, 2 row blocks): exercises the phase-gated
    # multi-block pipeline; row_tile=None exercises the auto-sized single block.
    for tile in (128, None):
        h_l, h_h = jax.block_until_ready(
            bwgnn_forward(x, A, params, thetas, row_tile=tile))
        assert h_l.shape == (N, H_FEATS) and h_h.shape == (N, H_FEATS)

        # Tight check against a reference mirroring the kernel's bf16 numerics ...
        assert jnp.allclose(h_l, m_l, atol=1e-2, rtol=1e-2)
        assert jnp.allclose(h_h, m_h, atol=1e-2, rtol=1e-2)

        # ... and a (looser, bf16-aware) check against the faithful f32 reference.
        assert jnp.allclose(h_l, r_l, atol=5e-2, rtol=5e-2)
        assert jnp.allclose(h_h, r_h, atol=5e-2, rtol=5e-2)

    print("KERNEL_OK")
</pallas_src>

<mosaic_0001>
module attributes {stable_mosaic.version = 11 : i64} {
  func.func @bwgnn_kernel(%arg0: i32, %arg1: i32, %arg2: memref<128x16xf32, #tpu.memory_space<vmem>>, %arg3: memref<128x256xi8, #tpu.memory_space<vmem>>, %arg4: memref<128x1xf32, #tpu.memory_space<vmem>>, %arg5: memref<16x32xf32, #tpu.memory_space<vmem>>, %arg6: memref<1x32xf32, #tpu.memory_space<vmem>>, %arg7: memref<32x32xf32, #tpu.memory_space<vmem>>, %arg8: memref<1x32xf32, #tpu.memory_space<vmem>>, %arg9: memref<64x128xf32, #tpu.memory_space<vmem>>, %arg10: memref<32x128xf32, #tpu.memory_space<vmem>>, %arg11: memref<1x128xf32, #tpu.memory_space<vmem>>, %arg12: memref<128x128xf32, #tpu.memory_space<vmem>>, %arg13: memref<256x64xf32, #tpu.memory_space<vmem>>, %arg14: memref<256x32xbf16, #tpu.memory_space<vmem>>, %arg15: memref<256x32xbf16, #tpu.memory_space<vmem>>) attributes {dimension_semantics = [#tpu.dimension_semantics<arbitrary>, #tpu.dimension_semantics<arbitrary>], iteration_bounds = array<i64: 3, 2>, scalar_prefetch = 0 : i64, scratch_operands = 3 : i64, tpu.core_type = #tpu.core_type<tc>, window_params = [{transform_indices = @transform_0, window_bounds = array<i64: 128, 16>}, {transform_indices = @transform_1, window_bounds = array<i64: 128, 256>}, {transform_indices = @transform_2, window_bounds = array<i64: 128, 1>}, {pipeline_mode = #tpu.pipeline_mode<synchronous>, transform_indices = @transform_3, window_bounds = array<i64: 16, 32>}, {pipeline_mode = #tpu.pipeline_mode<synchronous>, transform_indices = @transform_4, window_bounds = array<i64: 1, 32>}, {pipeline_mode = #tpu.pipeline_mode<synchronous>, transform_indices = @transform_5, window_bounds = array<i64: 32, 32>}, {pipeline_mode = #tpu.pipeline_mode<synchronous>, transform_indices = @transform_6, window_bounds = array<i64: 1, 32>}, {pipeline_mode = #tpu.pipeline_mode<synchronous>, transform_indices = @transform_7, window_bounds = array<i64: 64, 128>}, {pipeline_mode = #tpu.pipeline_mode<synchronous>, transform_indices = @transform_8, window_bounds = array<i64: 32, 128>}, {pipeline_mode = #tpu.pipeline_mode<synchronous>, transform_indices = @transform_9, window_bounds = array<i64: 1, 128>}, {transform_indices = @transform_10, window_bounds = array<i64: 128, 128>}]} {
    %c128_i32 = arith.constant 128 : i32
    %0 = arith.muli %arg1, %c128_i32 : i32
    %1 = tpu.assume_multiple %0, 128 : i32
    %c0 = arith.constant 0 : index
    %c0_0 = arith.constant 0 : index
    %2 = vector.load %arg4[%c0, %c0_0] : memref<128x1xf32, #tpu.memory_space<vmem>>, vector<128x1xf32>
    %c0_i32 = arith.constant 0 : i32
    %3 = arith.cmpi eq, %arg0, %c0_i32 : i32
    %4 = arith.extui %3 : i1 to i32
    %c0_i32_1 = arith.constant 0 : i32
    %5 = arith.cmpi ne, %4, %c0_i32_1 : i32
    scf.if %5 {
      %c0_4 = arith.constant 0 : index
      %c0_5 = arith.constant 0 : index
      %12 = vector.load %arg2[%c0_4, %c0_5] : memref<128x16xf32, #tpu.memory_space<vmem>>, vector<128x16xf32>
      %13 = arith.truncf %12 : vector<128x16xf32> to vector<128x16xbf16>
      %c0_6 = arith.constant 0 : index
      %c0_7 = arith.constant 0 : index
      %14 = vector.load %arg5[%c0_6, %c0_7] : memref<16x32xf32, #tpu.memory_space<vmem>>, vector<16x32xf32>
      %15 = arith.truncf %14 : vector<16x32xf32> to vector<16x32xbf16>
      %cst = arith.constant dense<0.000000e+00> : vector<128x32xf32>
      %16 = tpu.matmul %13, %15, %cst {dimension_numbers = #tpu.dot_dimension_numbers<[1], [0], [0], [1], [0, 0, 1, 1], [], []>} : vector<128x16xbf16>, vector<16x32xbf16>, vector<128x32xf32> -> vector<128x32xf32>
      %c0_8 = arith.constant 0 : index
      %c0_9 = arith.constant 0 : index
      %17 = vector.load %arg6[%c0_8, %c0_9] : memref<1x32xf32, #tpu.memory_space<vmem>>, vector<1x32xf32>
      %18 = vector.broadcast %17 : vector<1x32xf32> to vector<128x32xf32>
      %19 = arith.addf %16, %18 : vector<128x32xf32>
      %cst_10 = arith.constant 0.000000e+00 : f32
      %20 = vector.broadcast %cst_10 : f32 to vector<128x32xf32>
      %21 = arith.maximumf %19, %20 : vector<128x32xf32>
      %22 = arith.truncf %21 : vector<128x32xf32> to vector<128x32xbf16>
      %c0_11 = arith.constant 0 : index
      %c0_12 = arith.constant 0 : index
      %23 = vector.load %arg7[%c0_11, %c0_12] : memref<32x32xf32, #tpu.memory_space<vmem>>, vector<32x32xf32>
      %24 = arith.truncf %23 : vector<32x32xf32> to vector<32x32xbf16>
      %cst_13 = arith.constant dense<0.000000e+00> : vector<128x32xf32>
      %25 = tpu.matmul %22, %24, %cst_13 {dimension_numbers = #tpu.dot_dimension_numbers<[1], [0], [0], [1], [0, 0, 1, 1], [], []>} : vector<128x32xbf16>, vector<32x32xbf16>, vector<128x32xf32> -> vector<128x32xf32>
      %c0_14 = arith.constant 0 : index
      %c0_15 = arith.constant 0 : index
      %26 = vector.load %arg8[%c0_14, %c0_15] : memref<1x32xf32, #tpu.memory_space<vmem>>, vector<1x32xf32>
      %27 = vector.broadcast %26 : vector<1x32xf32> to vector<128x32xf32>
      %28 = arith.addf %25, %27 : vector<128x32xf32>
      %cst_16 = arith.constant 0.000000e+00 : f32
      %29 = vector.broadcast %cst_16 : f32 to vector<128x32xf32>
      %30 = arith.maximumf %28, %29 : vector<128x32xf32>
      %cst_17 = arith.constant 0.000000e+00 : f32
      %31 = vector.broadcast %cst_17 : f32 to vector<128x32xf32>
      %32 = tpu.concatenate %30, %31 in 1 : vector<128x32xf32>, vector<128x32xf32> -> vector<128x64xf32>
      %33 = arith.index_cast %1 : i32 to index
      %c0_18 = arith.constant 0 : index
      %34 = vector.load %arg13[%33, %c0_18] : memref<256x64xf32, #tpu.memory_space<vmem>>, vector<128x64xf32>
      tpu.vector_store %arg13[%33, %c0_18], %32 {strides = array<i32>} : memref<256x64xf32, #tpu.memory_space<vmem>>, vector<128x64xf32>,
      %35 = vector.broadcast %2 : vector<128x1xf32> to vector<128x32xf32>
      %36 = arith.mulf %30, %35 : vector<128x32xf32>
      %37 = arith.truncf %36 : vector<128x32xf32> to vector<128x32xbf16>
      %38 = arith.index_cast %1 : i32 to index
      %c0_19 = arith.constant 0 : index
      %39 = vector.load %arg14[%38, %c0_19] : memref<256x32xbf16, #tpu.memory_space<vmem>>, vector<128x32xbf16>
      tpu.vector_store %arg14[%38, %c0_19], %37 {strides = array<i32>} : memref<256x32xbf16, #tpu.memory_space<vmem>>, vector<128x32xbf16>,
    } else {
    }
    %c1_i32 = arith.constant 1 : i32
    %6 = arith.cmpi eq, %arg0, %c1_i32 : i32
    %7 = arith.extui %6 : i1 to i32
    %c0_i32_2 = arith.constant 0 : i32
    %8 = arith.cmpi ne, %7, %c0_i32_2 : i32
    scf.if %8 {
      %c0_4 = arith.constant 0 : index
      %c0_5 = arith.constant 0 : index
      %12 = vector.load %arg3[%c0_4, %c0_5] : memref<128x256xi8, #tpu.memory_space<vmem>>, vector<128x256xi8>
      %13 = arith.sitofp %12 : vector<128x256xi8> to vector<128x256xbf16>
      %c0_6 = arith.constant 0 : index
      %c0_7 = arith.constant 0 : index
      %14 = vector.load %arg14[%c0_6, %c0_7] : memref<256x32xbf16, #tpu.memory_space<vmem>>, vector<256x32xbf16>
      %cst = arith.constant dense<0.000000e+00> : vector<128x32xf32>
      %15 = tpu.matmul %13, %14, %cst {dimension_numbers = #tpu.dot_dimension_numbers<[1], [0], [0], [1], [0, 0, 1, 1], [], []>} : vector<128x256xbf16>, vector<256x32xbf16>, vector<128x32xf32> -> vector<128x32xf32>
      %16 = arith.index_cast %1 : i32 to index
      %c0_8 = arith.constant 0 : index
      %17 = vector.load %arg13[%16, %c0_8] : memref<256x64xf32, #tpu.memory_space<vmem>>, vector<128x64xf32>
      %18 = vector.extract_strided_slice %17 {offsets = [0, 0], sizes = [128, 32], strides = [1, 1]} : vector<128x64xf32> to vector<128x32xf32>
      %19 = vector.broadcast %2 : vector<128x1xf32> to vector<128x32xf32>
      %20 = arith.mulf %15, %19 : vector<128x32xf32>
      %21 = arith.subf %18, %20 : vector<128x32xf32>
      %22 = tpu.concatenate %18, %21 in 1 : vector<128x32xf32>, vector<128x32xf32> -> vector<128x64xf32>
      %23 = arith.index_cast %1 : i32 to index
      %c0_9 = arith.constant 0 : index
      %24 = vector.load %arg13[%23, %c0_9] : memref<256x64xf32, #tpu.memory_space<vmem>>, vector<128x64xf32>
      tpu.vector_store %arg13[%23, %c0_9], %22 {strides = array<i32>} : memref<256x64xf32, #tpu.memory_space<vmem>>, vector<128x64xf32>,
      %25 = vector.broadcast %2 : vector<128x1xf32> to vector<128x32xf32>
      %26 = arith.mulf %21, %25 : vector<128x32xf32>
      %27 = arith.truncf %26 : vector<128x32xf32> to vector<128x32xbf16>
      %28 = arith.index_cast %1 : i32 to index
      %c0_10 = arith.constant 0 : index
      %29 = vector.load %arg15[%28, %c0_10] : memref<256x32xbf16, #tpu.memory_space<vmem>>, vector<128x32xbf16>
      tpu.vector_store %arg15[%28, %c0_10], %27 {strides = array<i32>} : memref<256x32xbf16, #tpu.memory_space<vmem>>, vector<128x32xbf16>,
    } else {
    }
    %c2_i32 = arith.constant 2 : i32
    %9 = arith.cmpi eq, %arg0, %c2_i32 : i32
    %10 = arith.extui %9 : i1 to i32
    %c0_i32_3 = arith.constant 0 : i32
    %11 = arith.cmpi ne, %10, %c0_i32_3 : i32
    scf.if %11 {
      %c0_4 = arith.constant 0 : index
      %c0_5 = arith.constant 0 : index
      %12 = vector.load %arg3[%c0_4, %c0_5] : memref<128x256xi8, #tpu.memory_space<vmem>>, vector<128x256xi8>
      %13 = arith.sitofp %12 : vector<128x256xi8> to vector<128x256xbf16>
      %c0_6 = arith.constant 0 : index
      %c0_7 = arith.constant 0 : index
      %14 = vector.load %arg15[%c0_6, %c0_7] : memref<256x32xbf16, #tpu.memory_space<vmem>>, vector<256x32xbf16>
      %cst = arith.constant dense<0.000000e+00> : vector<128x32xf32>
      %15 = tpu.matmul %13, %14, %cst {dimension_numbers = #tpu.dot_dimension_numbers<[1], [0], [0], [1], [0, 0, 1, 1], [], []>} : vector<128x256xbf16>, vector<256x32xbf16>, vector<128x32xf32> -> vector<128x32xf32>
      %16 = arith.index_cast %1 : i32 to index
      %c0_8 = arith.constant 0 : index
      %17 = vector.load %arg13[%16, %c0_8] : memref<256x64xf32, #tpu.memory_space<vmem>>, vector<128x64xf32>
      %18 = vector.extract_strided_slice %17 {offsets = [0, 32], sizes = [128, 32], strides = [1, 1]} : vector<128x64xf32> to vector<128x32xf32>
      %19 = vector.broadcast %2 : vector<128x1xf32> to vector<128x32xf32>
      %20 = arith.mulf %15, %19 : vector<128x32xf32>
      %21 = arith.subf %18, %20 : vector<128x32xf32>
      %c0_9 = arith.constant 0 : index
      %c0_10 = arith.constant 0 : index
      %22 = vector.load %arg9[%c0_9, %c0_10] : memref<64x128xf32, #tpu.memory_space<vmem>>, vector<64x128xf32>
      %cst_11 = arith.constant dense<0.000000e+00> : vector<128x128xf32>
      %23 = tpu.matmul %17, %22, %cst_11 {dimension_numbers = #tpu.dot_dimension_numbers<[1], [0], [0], [1], [0, 0, 1, 1], [], []>} : vector<128x64xf32>, vector<64x128xf32>, vector<128x128xf32> -> vector<128x128xf32>
      %c0_12 = arith.constant 0 : index
      %c0_13 = arith.constant 0 : index
      %24 = vector.load %arg10[%c0_12, %c0_13] : memref<32x128xf32, #tpu.memory_space<vmem>>, vector<32x128xf32>
      %cst_14 = arith.constant dense<0.000000e+00> : vector<128x128xf32>
      %25 = tpu.matmul %21, %24, %cst_14 {dimension_numbers = #tpu.dot_dimension_numbers<[1], [0], [0], [1], [0, 0, 1, 1], [], []>} : vector<128x32xf32>, vector<32x128xf32>, vector<128x128xf32> -> vector<128x128xf32>
      %26 = arith.addf %23, %25 : vector<128x128xf32>
      %c0_15 = arith.constant 0 : index
      %c0_16 = arith.constant 0 : index
      %27 = vector.load %arg11[%c0_15, %c0_16] : memref<1x128xf32, #tpu.memory_space<vmem>>, vector<1x128xf32>
      %28 = vector.broadcast %27 : vector<1x128xf32> to vector<128x128xf32>
      %29 = arith.addf %26, %28 : vector<128x128xf32>
      %cst_17 = arith.constant 0.000000e+00 : f32
      %30 = vector.broadcast %cst_17 : f32 to vector<128x128xf32>
      %31 = arith.maximumf %29, %30 : vector<128x128xf32>
      %c0_18 = arith.constant 0 : index
      %c0_19 = arith.constant 0 : index
      %32 = vector.load %arg12[%c0_18, %c0_19] : memref<128x128xf32, #tpu.memory_space<vmem>>, vector<128x128xf32>
      tpu.vector_store %arg12[%c0_18, %c0_19], %31 {strides = array<i32>} : memref<128x128xf32, #tpu.memory_space<vmem>>, vector<128x128xf32>,
    } else {
    }
    return
  }
  func.func @transform_0(%arg0: i32, %arg1: i32) -> (i32, i32) {
    %c0_i32 = arith.constant 0 : i32
    %0 = arith.cmpi eq, %arg0, %c0_i32 : i32
    %c0_i32_0 = arith.constant 0 : i32
    %1 = arith.select %0, %arg1, %c0_i32_0 : i32
    %c0_i32_1 = arith.constant 0 : i32
    %c0_i32_2 = arith.constant 0 : i32
    return %1, %c0_i32_1 : i32, i32
  }
  func.func @transform_1(%arg0: i32, %arg1: i32) -> (i32, i32) {
    %c0_i32 = arith.constant 0 : i32
    %0 = arith.cmpi eq, %arg0, %c0_i32 : i32
    %c0_i32_0 = arith.constant 0 : i32
    %1 = arith.select %0, %c0_i32_0, %arg1 : i32
    %c0_i32_1 = arith.constant 0 : i32
    %c0_i32_2 = arith.constant 0 : i32
    return %1, %c0_i32_1 : i32, i32
  }
  func.func @transform_2(%arg0: i32, %arg1: i32) -> (i32, i32) {
    %c0_i32 = arith.constant 0 : i32
    %c0_i32_0 = arith.constant 0 : i32
    return %arg1, %c0_i32 : i32, i32
  }
  func.func @transform_3(%arg0: i32, %arg1: i32) -> (i32, i32) {
    %c0_i32 = arith.constant 0 : i32
    %c0_i32_0 = arith.constant 0 : i32
    %c0_i32_1 = arith.constant 0 : i32
    return %c0_i32, %c0_i32_0 : i32, i32
  }
  func.func @transform_4(%arg0: i32, %arg1: i32) -> (i32, i32) {
    %c0_i32 = arith.constant 0 : i32
    %c0_i32_0 = arith.constant 0 : i32
    %c0_i32_1 = arith.constant 0 : i32
    return %c0_i32, %c0_i32_0 : i32, i32
  }
  func.func @transform_5(%arg0: i32, %arg1: i32) -> (i32, i32) {
    %c0_i32 = arith.constant 0 : i32
    %c0_i32_0 = arith.constant 0 : i32
    %c0_i32_1 = arith.constant 0 : i32
    return %c0_i32, %c0_i32_0 : i32, i32
  }
  func.func @transform_6(%arg0: i32, %arg1: i32) -> (i32, i32) {
    %c0_i32 = arith.constant 0 : i32
    %c0_i32_0 = arith.constant 0 : i32
    %c0_i32_1 = arith.constant 0 : i32
    return %c0_i32, %c0_i32_0 : i32, i32
  }
  func.func @transform_7(%arg0: i32, %arg1: i32) -> (i32, i32) {
    %c0_i32 = arith.constant 0 : i32
    %c0_i32_0 = arith.constant 0 : i32
    %c0_i32_1 = arith.constant 0 : i32
    return %c0_i32, %c0_i32_0 : i32, i32
  }
  func.func @transform_8(%arg0: i32, %arg1: i32) -> (i32, i32) {
    %c0_i32 = arith.constant 0 : i32
    %c0_i32_0 = arith.constant 0 : i32
    %c0_i32_1 = arith.constant 0 : i32
    return %c0_i32, %c0_i32_0 : i32, i32
  }
  func.func @transform_9(%arg0: i32, %arg1: i32) -> (i32, i32) {
    %c0_i32 = arith.constant 0 : i32
    %c0_i32_0 = arith.constant 0 : i32
    %c0_i32_1 = arith.constant 0 : i32
    return %c0_i32, %c0_i32_0 : i32, i32
  }
  func.func @transform_10(%arg0: i32, %arg1: i32) -> (i32, i32) {
    %c2_i32 = arith.constant 2 : i32
    %0 = arith.cmpi eq, %arg0, %c2_i32 : i32
    %c0_i32 = arith.constant 0 : i32
    %1 = arith.select %0, %arg1, %c0_i32 : i32
    %c0_i32_0 = arith.constant 0 : i32
    %c0_i32_1 = arith.constant 0 : i32
    return %1, %c0_i32_0 : i32, i32
  }
}

</mosaic_0001>

<bundles_post_ra>
// kernel: tpu_custom_call.1
= control target key start
LH: loop header
LB: loop body
LE: loop exit
PB: predicated region body
PF: predicated region fallthrough
CT: control target
= control target key end

     0   :  { %s3790_s0 = inlined_call_operand.vmem [shape: f32[256,16], index: 0, kind: input, shape index: {}]   ;;  %s3791_s1 = inlined_call_operand.vmem [shape: s8[256,256], index: 1, kind: input, shape index: {}]   ;;  %s3792_s2 = inlined_call_operand.vmem [shape: f32[256,1], index: 2, kind: input, shape index: {}]   ;;  %s3793_s3 = inlined_call_operand.vmem [shape: f32[16,32], index: 3, kind: input, shape index: {}]   ;;  %s3794_s4 = inlined_call_operand.vmem [shape: f32[1,32], index: 4, kind: input, shape index: {}]   ;;  %s3795_s5 = inlined_call_operand.vmem [shape: f32[32,32], index: 5, kind: input, shape index: {}]   ;;  %s3796_s6 = inlined_call_operand.vmem [shape: f32[1,32], index: 6, kind: input, shape index: {}]   ;;  %s3797_s7 = inlined_call_operand.vmem [shape: f32[64,128], index: 7, kind: input, shape index: {}]   ;;  %s3798_s8 = inlined_call_operand.vmem [shape: f32[32,128], index: 8, kind: input, shape index: {}]   ;;  %s3799_s9 = inlined_call_operand.vmem [shape: f32[1,128], index: 9, kind: input, shape index: {}]   ;;  %s3800_s10 = inlined_call_operand.hbm [shape: f32[256,128], index: 10, kind: output, shape index: {}]  }
   0x1   :  { %3812 = sst [smem:[#allocation17_spill]] %s3800_s10 }
   0x2   :  { %15 = vsyncpa [#allocation6], 0 }
   0x3   :  { %17 = vsyncpa [#allocation6 + $0x1], 0  ;;  %s2984_s13 = smov 0   ;;  %s2986_s14 = smov 0  }
   0x4   :  { %s2988_s15 = smov 0   ;;  %s2990_s16 = smov 0  }
   0x5   :  { %s2992_s17 = smov 0   ;;  %s2994_s18 = smov 0  }
   0x6   :  { %s2996_s19 = smov 0   ;;  %s2998_s20 = smov 0  }
   0x7 LB: > { %3813 = sst [smem:[#allocation8_spill]] %s2890_s13  ;;  %s2305_s21 = sadd.s32 4294967295, %s2918_s20   ;;  %s2918_s20 = sphi %s2998_s20, %s23_s20   ;;  %s2914_s19 = sphi %s2996_s19, %s3835_s19   ;;  %s2910_s18 = sphi %s2994_s18, %s3834_s18   ;;  %s2906_s17 = sphi %s2992_s17, %s3833_s17   ;;  %s2902_s16 = sphi %s2990_s16, %s3832_s16   ;;  %s2898_s15 = sphi %s2988_s15, %s3838_s15   ;;  %s2894_s14 = sphi %s2986_s14, %s3837_s14   ;;  %s2890_s13 = sphi %s2984_s13, %s3836_s13  }
   0x8   : > { %3814 = sst [smem:[#allocation9_spill]] %s2898_s15  ;;  %s32_s22 = sadd.s32 1, %s2910_s18 }
   0x9   : > { %3815 = sst [smem:[#allocation10_spill]] %s2910_s18  ;;  %s35_s23 = sadd.s32 1, %s2914_s19 }
   0xa   : > { %3816 = sst [smem:[#allocation11_spill]] %s2914_s19  ;;  %p33_p0 = scmp.ge.s32.totalorder %s32_s22, 2 }
   0xb   : > { %3817 = sst [smem:[#allocation12_spill]] %s2918_s20  ;;  %p272_p1 = scmp.eq.s32.totalorder %s2914_s19, 2 }
   0xc   : > { %s2306_s24 = sadd.s32 4294967294, %s2918_s20   ;;  %p289_p2 = scmp.ne.s32.totalorder %s2898_s15, %s2894_s14 }
   0xd   : > { %s3840_s22 = smov (%p33_p0, %s32_s22), 0  ;;  %s3842_s23 = smov (!%p33_p0, %s35_s23), %s2914_s19 }
   0xe   : > { %3818 = sst [smem:[#allocation13_spill]] %s3840_s22  ;;  %p37_p3 = scmp.ge.s32.totalorder %s3842_s23, 3 }
   0xf   : > { %s273_s25 = scalar_select %p272_p1, %s2910_s18, 0 }
  0x10   : > { %p290_p4 = scmp.eq.s32.totalorder %s2305_s21, 5  ;;  %p295_p5 = scmp.ne.s32.totalorder %s2894_s14, %s2890_s13 }
  0x11   : > { %p296_p6 = scmp.eq.s32.totalorder %s2306_s24, 5  ;;  %s3844_s23 = smov (%p37_p3, %s3842_s23), 0 }
  0x12   : > { %3819 = sst [smem:[#allocation14_spill]] %s3844_s23  ;;  %p3039_p7 = por %p290_p4, %p289_p2 }
  0x13   : > { %p3043_p8 = por %p296_p6, %p295_p5  ;;  %p274_p9 = scmp.eq.s32.totalorder %s3844_s23, 2 }
  0x14   : > { %p2309_p10 = scmp.ge.s32.totalorder %s2918_s20, 1  ;;  %p371_p11 = scmp.lt.s32.totalorder %s2918_s20, 7 }
  0x15   : > { %s3821_s27 = scalar_select %p3043_p8, 1, 0 }
  0x16   : > { %s275_s28 = scalar_select %p274_p9, %s3840_s22, 0 }
  0x17   : > { %3822 = sst [smem:[#allocation15_spill]] %s3821_s27  ;;  %p372_p12 = pnand %p2309_p10, %p371_p11 }
  0x18   : > { %s276_s29 = ssub.s32 %s273_s25, %s275_s28  ;;  %s279_s30 = sadd.s32 1, %s2898_s15 }
  0x19   : > { %p277_p13 = scmp.eq.s32.totalorder %s276_s29, 0  ;;  %375 = sbr.rel (%p372_p12) target bundleno = 1742 (0x6ce), region = 60 }
  0x1a   : > { %s3805_s12 = sand.u32 (!%p372_p12), 1, %s2894_s14   ;;  %p424_p0 = scmp.eq.s32.totalorder (!%p372_p12), %s2906_s17, 0 }
  0x1b   : > { %s3053_s11 = scalar_select %p277_p13, %s2898_s15, %s279_s30  }
  0x1c   : > { %s3059_s21 = sshll.u32 (!%p372_p12), %s3805_s12, 7  ;;  %s2316_s24 = sshll.u32 (!%p372_p12), %s2902_s16, 4 }
  0x1d   : > { %3823 = sst [smem:[#allocation16_spill]] %s3053_s11  ;;  %s3065_s29 = sshll.u32 (!%p372_p12), %s2902_s16, 7 }
  0x1e   : > { %p446_p3 = scmp.lt.s32.totalorder (!%p372_p12), %s2316_s24, 31  ;;  %s3113_s15 = scalar_lea.vmem (!%p372_p12), [#allocation5], %s3059_s21 }
  0x1f   : > { %p2319_p4 = scmp.ne.s32.totalorder (!%p372_p12), %s2906_s17, 0 }
  0x20   : > { %s425_s23 = scalar_select %p424_p0, %s2902_s16, 0 }
  0x21   : > { %s435_s25 = scalar_select %p424_p0, 0, %s2902_s16 }
  0x22   : > { %s2311_s28 = sshll.u32 %s425_s23, 4  ;;  %s3850_s24 = smov (!%p446_p3, %s2316_s24), 31  ;;  %v500_v16 = vld [vmem:[%s3793_s3] sm:$0xff] (!%p2319_p4)  ;;  %v501_v17 = vld [vmem:[%s3793_s3 + $0x8] sm:$0xff] (!%p2319_p4)  ;;  %vm510_vm0 = vcmask (!%p2319_p4), 130048   ;;  %v658_v46 = vld [vmem:[%s3795_s5 + $0x10] sm:$0xff] (!%p2319_p4) }
  0x23   : > { %p427_p1 = scmp.lt.s32.totalorder %s2311_s28, 31  ;;  %s2313_s30 = sshll.u32 %s435_s25, 2  ;;  %v502_v19 = vpack.c.bf16 (!%p2319_p4), %v501_v17, %v500_v16  ;;  %v656_v43 = vld [vmem:[%s3795_s5] sm:$0xff] (!%p2319_p4)  ;;  %v657_v44 = vld [vmem:[%s3795_s5 + $0x8] sm:$0xff] (!%p2319_p4)  ;;  %v659_v47 = vld [vmem:[%s3795_s5 + $0x18] sm:$0xff] (!%p2319_p4)  ;;  %v2920_v49 = vmov (!%p2319_p4), 0  }
  0x24   : > { %p437_p2 = scmp.lt.s32.totalorder %s2313_s30, 7  ;;  %s2317_s23 = sshll.u32 %s3850_s24, 3  ;;  %v660_v45 = vpack.c.bf16 (!%p2319_p4), %v657_v44, %v656_v43  ;;  %v661_v48 = vpack.c.bf16 (!%p2319_p4), %v659_v47, %v658_v46  ;;  %2819 = vset.pattern.permute.xlu1 (!%p2319_p4), %v2920_v49  ;;  %2818 = vset.pattern.permute.xlu0 (!%p2319_p4), %v2920_v49  ;;  %v2320_v50 = vld [vmem:[%s3794_s4] ss:$0 sm:$0xff] (!%p2319_p4)  ;;  %vm669_vm1 = vcmask (!%p2319_p4), 261120   ;;  %vm824_vm2 = vcmask (!%p2319_p4), 523264  }
  0x25   : > { %s3846_s28 = smov (!%p427_p1, %s2311_s28), 31  ;;  %s449_s10 = scalar_lea.vmem %s3792_s2, %s2317_s23  ;;  %2573 = vmatprep.subr.bf16.mxu0 (!%p2319_p4), %v502_v19 }
  0x26   : > { %s3848_s30 = smov (!%p437_p2, %s2313_s30), 7  ;;  %s2312_s22 = sshll.u32 %s3846_s28, 3  ;;  %v3080_v0 = vld [vmem:[%s449_s10] sm:$0xff]  ;;  %v3082_v1 = vld [vmem:[%s449_s10 + $0x8] sm:$0xff]  ;;  %v3084_v2 = vld [vmem:[%s449_s10 + $0x10] sm:$0xff]  ;;  %2574 = vmatpush3.bf16.msra.mxu0 (!%p2319_p4), %v502_v19  ;;  %2591 = vmatprep.subr.bf16.mxu1 (!%p2319_p4), %v660_v45 }
  0x27   : > { %s3070_s11 = scalar_lea.vmem %s3790_s0, %s2312_s22  ;;  %s2380_s12 = sshll.u32 %s3848_s30, 4  ;;  %v3086_v3 = vld [vmem:[%s449_s10 + $0x18] sm:$0xff]  ;;  %v3088_v4 = vld [vmem:[%s449_s10 + $0x20] sm:$0xff]  ;;  %v3090_v5 = vld [vmem:[%s449_s10 + $0x28] sm:$0xff]  ;;  %2592 = vmatpush3.bf16.msra.mxu1 (!%p2319_p4), %v660_v45  ;;  %853 = vperm.xlu1 (!%p2319_p4), %2819, %v3084_v2  }
  0x28   : > { %s3075_s13 = scalar_lea.vmem %s3791_s1, %s2380_s12  ;;  %v3092_v6 = vld [vmem:[%s449_s10 + $0x30] sm:$0xff]  ;;  %v3094_v7 = vld [vmem:[%s449_s10 + $0x38] sm:$0xff]  ;;  %v3096_v8 = vld [vmem:[%s449_s10 + $0x40] sm:$0xff]  ;;  %475 = sbr.rel (%p2319_p4) target bundleno = 517 (0x205), region = 64  ;;  %2593 = vmatprep.subr.bf16.mxu1 (!%p2319_p4), %v661_v48  ;;  %843 = vperm.xlu0 (!%p2319_p4), %2818, %v3080_v0  }
  0x29   : > { %v3098_v9 = vld [vmem:[%s449_s10 + $0x48] sm:$0xff]  ;;  %v3100_v10 = vld [vmem:[%s449_s10 + $0x50] sm:$0xff]  ;;  %v3102_v11 = vld [vmem:[%s449_s10 + $0x58] sm:$0xff]  ;;  %s945_s20 = sshra.s32 (!%p2319_p4), %s3065_s29, 4 }
  0x2a   : > { %v3104_v12 = vld [vmem:[%s449_s10 + $0x60] sm:$0xff]  ;;  %v3106_v13 = vld [vmem:[%s449_s10 + $0x68] sm:$0xff]  ;;  %v3108_v14 = vld [vmem:[%s449_s10 + $0x70] sm:$0xff]  ;;  %s2338_s22 = sshll.u32 (!%p2319_p4), %s945_s20, 3 }
  0x2b   : > { %v3110_v15 = vld [vmem:[%s449_s10 + $0x78] sm:$0xff]  ;;  %v476_v18 = vld [vmem:[%s3070_s11] sm:$0xff] (!%p2319_p4)  ;;  %v477_v20 = vld [vmem:[%s3070_s11 + $0x8] sm:$0xff] (!%p2319_p4)  ;;  %2594 = vmatpush3.bf16.msra.mxu1 (!%p2319_p4), %v661_v48  ;;  %858 = vperm.xlu1 (!%p2319_p4), %2819, %v3086_v3   ;;  %s3197_s10 = scalar_lea.vmem (!%p2319_p4), [#allocation2], %s3065_s29  ;;  %s3212_s27 = scalar_lea.vmem (!%p2319_p4), [#allocation3], %s2338_s22 }
  0x2c   : > { %v478_v21 = vld [vmem:[%s3070_s11 + $0x10] sm:$0xff] (!%p2319_p4)  ;;  %v479_v22 = vld [vmem:[%s3070_s11 + $0x18] sm:$0xff] (!%p2319_p4)  ;;  %v492_v23 = vpack.c.bf16 (!%p2319_p4), %v477_v20, %v476_v18  ;;  %v480_v24 = vld [vmem:[%s3070_s11 + $0x20] sm:$0xff] (!%p2319_p4)  ;;  %848 = vperm.xlu0 (!%p2319_p4), %2818, %v3082_v1  }
  0x2d   : > { %v481_v25 = vld [vmem:[%s3070_s11 + $0x28] sm:$0xff] (!%p2319_p4)  ;;  %v493_v26 = vpack.c.bf16 (!%p2319_p4), %v479_v22, %v478_v21  ;;  %v482_v28 = vld [vmem:[%s3070_s11 + $0x30] sm:$0xff] (!%p2319_p4)  ;;  %v483_v29 = vld [vmem:[%s3070_s11 + $0x38] sm:$0xff] (!%p2319_p4) }
  0x2e   : > { %2575 = vmatprep.mubr.msk.bf16.mxu0 (!%p2319_p4), %vm510_vm0, %v492_v23  ;;  %v494_v27 = vpack.c.bf16 (!%p2319_p4), %v481_v25, %v480_v24  ;;  %v484_v30 = vld [vmem:[%s3070_s11 + $0x40] sm:$0xff] (!%p2319_p4)  ;;  %v485_v31 = vld [vmem:[%s3070_s11 + $0x48] sm:$0xff] (!%p2319_p4)  ;;  %v495_v32 = vpack.c.bf16 (!%p2319_p4), %v483_v29, %v482_v28  ;;  %v486_v34 = vld [vmem:[%s3070_s11 + $0x50] sm:$0xff] (!%p2319_p4) }
  0x2f   : > { %2576 = vmatmul.mubr.msk.bf16.vlgmr.msra.gmra.mrb[0].mxu0 %vm510_vm0, %v493_v26  ;;  %v496_v33 = vpack.c.bf16 %v485_v31, %v484_v30  ;;  %v487_v35 = vld [vmem:[%s3070_s11 + $0x58] sm:$0xff]  ;;  %v488_v36 = vld [vmem:[%s3070_s11 + $0x60] sm:$0xff]  ;;  %v489_v37 = vld [vmem:[%s3070_s11 + $0x68] sm:$0xff]  ;;  %868 = vperm.xlu1 %2819, %v3090_v5  }
  0x30   : > { %2579 = vmatprep.mubr.msk.bf16.mxu0 %vm510_vm0, %v494_v27  ;;  %v497_v38 = vpack.c.bf16 %v487_v35, %v486_v34  ;;  %v498_v39 = vpack.c.bf16 %v489_v37, %v488_v36  ;;  %v490_v40 = vld [vmem:[%s3070_s11 + $0x70] sm:$0xff]  ;;  %v491_v41 = vld [vmem:[%s3070_s11 + $0x78] sm:$0xff]  ;;  %863 = vperm.xlu0 %2818, %v3088_v4  }
  0x31   : > { %v499_v42 = vpack.c.bf16 %v491_v41, %v490_v40 }
  0x33   : > { %878 = vperm.xlu1 %2819, %v3094_v7  }
  0x34   : > { %873 = vperm.xlu0 %2818, %v3092_v6  }
  0x37   : > { %2580 = vmatmul.mubr.msk.bf16.gmra.mrb[4].mxu0 %vm510_vm0, %v495_v32  ;;  %888 = vperm.xlu1 %2819, %v3098_v9  }
  0x38   : > { %2583 = vmatprep.mubr.msk.bf16.mxu0 %vm510_vm0, %v496_v33  ;;  %883 = vperm.xlu0 %2818, %v3096_v8  }
  0x3b   : > { %898 = vperm.xlu1 %2819, %v3102_v11  }
  0x3c   : > { %893 = vperm.xlu0 %2818, %v3100_v10  }
  0x3f   : > { %2584 = vmatmul.mubr.msk.bf16.gmra.mrb[8].mxu0 %vm510_vm0, %v497_v38  ;;  %908 = vperm.xlu1 %2819, %v3106_v13  }
  0x40   : > { %2587 = vmatprep.mubr.msk.bf16.mxu0 %vm510_vm0, %v498_v39  ;;  %903 = vperm.xlu0 %2818, %v3104_v12  }
  0x43   : > { %918 = vperm.xlu1 %2819, %v3110_v15  }
  0x44   : > { %913 = vperm.xlu0 %2818, %v3108_v14  }
  0x47   : > { %2588 = vmatmul.mubr.msk.bf16.gmra.mrb[12].mxu0 %vm510_vm0, %v499_v42 }
 0x102   : > { %v2577_v51 = vpop.f32.mrb[0].mxu0 }
 0x103   : > { %v578_v52 = vadd.f32 %v2577_v51, %v2320_v50  ;;  %v569_v53 = vpop.f32.mrb[1].mxu0 }
 0x104   : > { %v570_v54 = vadd.f32 %v2320_v50, %v569_v53  ;;  %v2578_v55 = vpop.f32.mrb[2].mxu0 }
 0x105   : > { %v581_v56 = vadd.f32 %v2578_v55, %v2320_v50  ;;  %v572_v57 = vpop.f32.mrb[3].mxu0  ;;  %v634_v59 = vmax.f32 %v578_v52, 0.0 }
 0x106   : > { %v573_v58 = vadd.f32 %v2320_v50, %v572_v57  ;;  %v632_v61 = vmax.f32 %v570_v54, 0.0 }
 0x107   : > { %v635_v60 = vmax.f32 %v581_v56, 0.0 }
 0x108   : > { %v633_v62 = vmax.f32 %v573_v58, 0.0 }
 0x109   : > { %v649_v63 = vpack.c.bf16 %v635_v60, %v634_v59  ;;  %v854_v60 = vpop.permute.xlu1 %853 }
 0x10a   : > { %v2581_v16 = vpop.f32.mrb[4].mxu0  ;;  %v648_v17 = vpack.c.bf16 %v633_v62, %v632_v61  ;;  %v844_v61 = vpop.permute.xlu0 %843 }
 0x10b   : > { %v594_v18 = vadd.f32 %v2581_v16, %v2320_v50  ;;  %v585_v19 = vpop.f32.mrb[5].mxu0  ;;  %v3188_v16 = vld [vmem:[%s3796_s6] ss:$0 sm:$0xff] }
 0x10c   : > { %v586_v20 = vadd.f32 %v2320_v50, %v585_v19  ;;  %v2582_v21 = vpop.f32.mrb[6].mxu0  ;;  %2595 = vmatprep.mubr.msk.bf16.mxu1 %vm669_vm1, %v648_v17 }
 0x10d   : > { %v597_v22 = vadd.f32 %v2582_v21, %v2320_v50  ;;  %v588_v23 = vpop.f32.mrb[7].mxu0  ;;  %2596 = vmatmul.mubr.msk.bf16.vlgmr.msra.gmra.mrb[0].mxu1 %vm669_vm1, %v649_v63  ;;  %v638_v25 = vmax.f32 %v594_v18, 0.0  ;;  %v859_v62 = vpop.permute.xlu1 %858 }
 0x10e   : > { %v589_v24 = vadd.f32 %v2320_v50, %v588_v23  ;;  %v636_v27 = vmax.f32 %v586_v20, 0.0  ;;  %v849_v63 = vpop.permute.xlu0 %848 }
 0x10f   : > { %v639_v26 = vmax.f32 %v597_v22, 0.0 }
 0x110   : > { %v637_v28 = vmax.f32 %v589_v24, 0.0 }
 0x111   : > { %v651_v29 = vpack.c.bf16 %v639_v26, %v638_v25 }
 0x112   : > { %v650_v30 = vpack.c.bf16 %v637_v28, %v636_v27  ;;  %v2585_v31 = vpop.f32.mrb[8].mxu0  ;;  %v864_v17 = vpop.permute.xlu0 %863 }
 0x113   : > { %v610_v32 = vadd.f32 %v2585_v31, %v2320_v50  ;;  %v601_v33 = vpop.f32.mrb[9].mxu0 }
 0x114   : > { %v602_v34 = vadd.f32 %v2320_v50, %v601_v33  ;;  %v2586_v35 = vpop.f32.mrb[10].mxu0  ;;  %2599 = vmatprep.mubr.msk.bf16.mxu1 %vm669_vm1, %v650_v30 }
 0x115   : > { %v613_v36 = vadd.f32 %v2586_v35, %v2320_v50  ;;  %v604_v37 = vpop.f32.mrb[11].mxu0  ;;  %2600 = vmatmul.mubr.msk.bf16.gmra.mrb[4].mxu1 %vm669_vm1, %v651_v29  ;;  %v642_v39 = vmax.f32 %v610_v32, 0.0 }
 0x116   : > { %v605_v38 = vadd.f32 %v2320_v50, %v604_v37  ;;  %v640_v41 = vmax.f32 %v602_v34, 0.0  ;;  %v874_v31 = vpop.permute.xlu0 %873 }
 0x117   : > { %v643_v40 = vmax.f32 %v613_v36, 0.0 }
 0x118   : > { %v641_v42 = vmax.f32 %v605_v38, 0.0 }
 0x119   : > { %v653_v43 = vpack.c.bf16 %v643_v40, %v642_v39 }
 0x11a   : > { %v652_v44 = vpack.c.bf16 %v641_v42, %v640_v41  ;;  %v2589_v45 = vpop.f32.mrb[12].mxu0 }
 0x11b   : > { %v626_v46 = vadd.f32 %v2589_v45, %v2320_v50  ;;  %v617_v47 = vpop.f32.mrb[13].mxu0 }
 0x11c   : > { %v618_v48 = vadd.f32 %v2320_v50, %v617_v47  ;;  %v2590_v49 = vpop.f32.mrb[14].mxu0  ;;  %2603 = vmatprep.mubr.msk.bf16.mxu1 %vm669_vm1, %v652_v44 }
 0x11d   : > { %v629_v51 = vadd.f32 %v2590_v49, %v2320_v50  ;;  %v620_v52 = vpop.f32.mrb[15].mxu0  ;;  %2604 = vmatmul.mubr.msk.bf16.gmra.mrb[8].mxu1 %vm669_vm1, %v653_v43  ;;  %v646_v54 = vmax.f32 %v626_v46, 0.0 }
 0x11e   : > { %v621_v53 = vadd.f32 %v2320_v50, %v620_v52  ;;  %v644_v56 = vmax.f32 %v618_v48, 0.0  ;;  %v869_v50 = vpop.permute.xlu1 %868  ;;  %v884_v52 = vpop.permute.xlu0 %883 }
 0x11f   : > { %v647_v55 = vmax.f32 %v629_v51, 0.0 }
 0x120   : > { %v645_v57 = vmax.f32 %v621_v53, 0.0 }
 0x121   : > { %v655_v58 = vpack.c.bf16 %v647_v55, %v646_v54 }
 0x122   : > { %v654_v59 = vpack.c.bf16 %v645_v57, %v644_v56  ;;  %v879_v28 = vpop.permute.xlu1 %878 }
 0x124   : > { %2607 = vmatprep.mubr.msk.bf16.mxu1 %vm669_vm1, %v654_v59 }
 0x125   : > { %2608 = vmatmul.mubr.msk.bf16.gmra.mrb[12].mxu1 %vm669_vm1, %v655_v58 }
 0x126   : > { %v889_v47 = vpop.permute.xlu1 %888 }
 0x1e0   : > { %v2597_v18 = vpop.f32.mrb[0].mxu1 }
 0x1e1   : > { %v737_v19 = vadd.f32 %v2597_v18, %v3188_v16  ;;  %v728_v20 = vpop.f32.mrb[1].mxu1 }
 0x1e2   : > { %v729_v21 = vadd.f32 %v3188_v16, %v728_v20  ;;  %v2598_v22 = vpop.f32.mrb[2].mxu1  ;;  %v899_v20 = vpop.permute.xlu1 %898 }
 0x1e3   : > { %v793_v23 = vmax.f32 %v737_v19, 0.0  ;;  %v740_v24 = vadd.f32 %v2598_v22, %v3188_v16  ;;  %v731_v25 = vpop.f32.mrb[3].mxu1 }
 0x1e4   : > { %v791_v26 = vmax.f32 %v729_v21, 0.0  ;;  %v732_v27 = vadd.f32 %v3188_v16, %v731_v25 }
 0x1e5   : > { %v809_v29 = vsel %vm669_vm1, %v793_v23, 0.0  ;;  %v794_v30 = vmax.f32 %v740_v24, 0.0  ;;  %v923_v34 = vmul.f32 %v854_v60, %v793_v23  ;;  %v894_v24 = vpop.permute.xlu0 %893 }
 0x1e6   : > { %827 = vst.msk [vmem:[%s3197_s10 + $0x10] sm:$0xff] %vm824_vm2, %v809_v29  ;;  %v807_v32 = vsel %vm669_vm1, %v791_v26, 0.0  ;;  %v792_v33 = vmax.f32 %v732_v27, 0.0  ;;  %v921_v37 = vmul.f32 %v844_v61, %v791_v26 }
 0x1e7   : > { %825 = vst.msk [vmem:[%s3197_s10] sm:$0xff] %vm824_vm2, %v807_v32  ;;  %v810_v35 = vsel %vm669_vm1, %v794_v30, 0.0  ;;  %v924_v36 = vmul.f32 %v859_v62, %v794_v30 }
 0x1e8   : > { %828 = vst.msk [vmem:[%s3197_s10 + $0x18] sm:$0xff] %vm824_vm2, %v810_v35  ;;  %v808_v38 = vsel %vm669_vm1, %v792_v33, 0.0  ;;  %v922_v39 = vmul.f32 %v849_v63, %v792_v33  ;;  %v2601_v40 = vpop.f32.mrb[4].mxu1  ;;  %v909_v35 = vpop.permute.xlu1 %908 }
 0x1e9   : > { %v938_v41 = vpack.c.bf16 %v924_v36, %v923_v34  ;;  %826 = vst.msk [vmem:[%s3197_s10 + $0x8] sm:$0xff] %vm824_vm2, %v808_v38  ;;  %v753_v42 = vadd.f32 %v2601_v40, %v3188_v16  ;;  %v744_v43 = vpop.f32.mrb[5].mxu1 }
 0x1ea   : > { %v937_v44 = vpack.c.bf16 %v922_v39, %v921_v37  ;;  %v745_v45 = vadd.f32 %v3188_v16, %v744_v43  ;;  %v2602_v46 = vpop.f32.mrb[6].mxu1  ;;  %v904_v39 = vpop.permute.xlu0 %903 }
 0x1eb   : > { %950 = vst.msk [vmem:[%s3212_s27 + $0x8] sm:$0xff] %vm669_vm1, %v938_v41  ;;  %v797_v48 = vmax.f32 %v753_v42, 0.0  ;;  %v756_v49 = vadd.f32 %v2602_v46, %v3188_v16  ;;  %v747_v51 = vpop.f32.mrb[7].mxu1 }
 0x1ec   : > { %949 = vst.msk [vmem:[%s3212_s27] sm:$0xff] %vm669_vm1, %v937_v44  ;;  %v795_v53 = vmax.f32 %v745_v45, 0.0  ;;  %v748_v54 = vadd.f32 %v3188_v16, %v747_v51 }
 0x1ed   : > { %v813_v55 = vsel %vm669_vm1, %v797_v48, 0.0  ;;  %v798_v56 = vmax.f32 %v756_v49, 0.0  ;;  %v927_v59 = vmul.f32 %v874_v31, %v797_v48 }
 0x1ee   : > { %831 = vst.msk [vmem:[%s3197_s10 + $0x30] sm:$0xff] %vm824_vm2, %v813_v55  ;;  %v811_v57 = vsel %vm669_vm1, %v795_v53, 0.0  ;;  %v796_v58 = vmax.f32 %v748_v54, 0.0  ;;  %v925_v62 = vmul.f32 %v864_v17, %v795_v53 }
 0x1ef   : > { %829 = vst.msk [vmem:[%s3197_s10 + $0x20] sm:$0xff] %vm824_vm2, %v811_v57  ;;  %v814_v60 = vsel %vm669_vm1, %v798_v56, 0.0  ;;  %v928_v61 = vmul.f32 %v879_v28, %v798_v56 }
 0x1f0   : > { %832 = vst.msk [vmem:[%s3197_s10 + $0x38] sm:$0xff] %vm824_vm2, %v814_v60  ;;  %v812_v63 = vsel %vm669_vm1, %v796_v58, 0.0  ;;  %v926_v18 = vmul.f32 %v869_v50, %v796_v58  ;;  %v2605_v19 = vpop.f32.mrb[8].mxu1  ;;  %v919_v58 = vpop.permute.xlu1 %918 }
 0x1f1   : > { %v940_v21 = vpack.c.bf16 %v928_v61, %v927_v59  ;;  %830 = vst.msk [vmem:[%s3197_s10 + $0x28] sm:$0xff] %vm824_vm2, %v812_v63  ;;  %v769_v22 = vadd.f32 %v2605_v19, %v3188_v16  ;;  %v760_v23 = vpop.f32.mrb[9].mxu1  ;;  %v914_v59 = vpop.permute.xlu0 %913 }
 0x1f2   : > { %v939_v25 = vpack.c.bf16 %v926_v18, %v925_v62  ;;  %v761_v26 = vadd.f32 %v3188_v16, %v760_v23  ;;  %v2606_v17 = vpop.f32.mrb[10].mxu1 }
 0x1f3   : > { %952 = vst.msk [vmem:[%s3212_s27 + $0x18] sm:$0xff] %vm669_vm1, %v940_v21  ;;  %v801_v27 = vmax.f32 %v769_v22, 0.0  ;;  %v772_v50 = vadd.f32 %v2606_v17, %v3188_v16  ;;  %v763_v28 = vpop.f32.mrb[11].mxu1 }
 0x1f4   : > { %951 = vst.msk [vmem:[%s3212_s27 + $0x10] sm:$0xff] %vm669_vm1, %v939_v25  ;;  %v799_v29 = vmax.f32 %v761_v26, 0.0  ;;  %v764_v30 = vadd.f32 %v3188_v16, %v763_v28 }
 0x1f5   : > { %v817_v31 = vsel %vm669_vm1, %v801_v27, 0.0  ;;  %v802_v32 = vmax.f32 %v772_v50, 0.0  ;;  %v931_v36 = vmul.f32 %v894_v24, %v801_v27 }
 0x1f6   : > { %835 = vst.msk [vmem:[%s3197_s10 + $0x50] sm:$0xff] %vm824_vm2, %v817_v31  ;;  %v815_v33 = vsel %vm669_vm1, %v799_v29, 0.0  ;;  %v800_v34 = vmax.f32 %v764_v30, 0.0  ;;  %v929_v40 = vmul.f32 %v884_v52, %v799_v29 }
 0x1f7   : > { %833 = vst.msk [vmem:[%s3197_s10 + $0x40] sm:$0xff] %vm824_vm2, %v815_v33  ;;  %v818_v37 = vsel %vm669_vm1, %v802_v32, 0.0  ;;  %v932_v38 = vmul.f32 %v899_v20, %v802_v32 }
 0x1f8   : > { %836 = vst.msk [vmem:[%s3197_s10 + $0x58] sm:$0xff] %vm824_vm2, %v818_v37  ;;  %v816_v41 = vsel %vm669_vm1, %v800_v34, 0.0  ;;  %v930_v42 = vmul.f32 %v889_v47, %v800_v34  ;;  %v2609_v43 = vpop.f32.mrb[12].mxu1 }
 0x1f9   : > { %v942_v44 = vpack.c.bf16 %v932_v38, %v931_v36  ;;  %834 = vst.msk [vmem:[%s3197_s10 + $0x48] sm:$0xff] %vm824_vm2, %v816_v41  ;;  %v785_v45 = vadd.f32 %v2609_v43, %v3188_v16  ;;  %v776_v46 = vpop.f32.mrb[13].mxu1 }
 0x1fa   : > { %v941_v48 = vpack.c.bf16 %v930_v42, %v929_v40  ;;  %v777_v49 = vadd.f32 %v3188_v16, %v776_v46  ;;  %v2610_v51 = vpop.f32.mrb[14].mxu1 }
 0x1fb   : > { %954 = vst.msk [vmem:[%s3212_s27 + $0x28] sm:$0xff] %vm669_vm1, %v942_v44  ;;  %v805_v52 = vmax.f32 %v785_v45, 0.0  ;;  %v788_v53 = vadd.f32 %v2610_v51, %v3188_v16  ;;  %v779_v54 = vpop.f32.mrb[15].mxu1 }
 0x1fc   : > { %953 = vst.msk [vmem:[%s3212_s27 + $0x20] sm:$0xff] %vm669_vm1, %v941_v48  ;;  %v803_v47 = vmax.f32 %v777_v49, 0.0  ;;  %v780_v55 = vadd.f32 %v3188_v16, %v779_v54 }
 0x1fd   : > { %v821_v56 = vsel %vm669_vm1, %v805_v52, 0.0  ;;  %v806_v57 = vmax.f32 %v788_v53, 0.0  ;;  %v935_v62 = vmul.f32 %v914_v59, %v805_v52 }
 0x1fe   : > { %839 = vst.msk [vmem:[%s3197_s10 + $0x70] sm:$0xff] %vm824_vm2, %v821_v56  ;;  %v819_v60 = vsel %vm669_vm1, %v803_v47, 0.0  ;;  %v804_v61 = vmax.f32 %v780_v55, 0.0  ;;  %v933_v16 = vmul.f32 %v904_v39, %v803_v47 }
 0x1ff   : > { %837 = vst.msk [vmem:[%s3197_s10 + $0x60] sm:$0xff] %vm824_vm2, %v819_v60  ;;  %v822_v63 = vsel %vm669_vm1, %v806_v57, 0.0  ;;  %v936_v18 = vmul.f32 %v919_v58, %v806_v57 }
 0x200   : > { %840 = vst.msk [vmem:[%s3197_s10 + $0x78] sm:$0xff] %vm824_vm2, %v822_v63  ;;  %v820_v19 = vsel %vm669_vm1, %v804_v61, 0.0  ;;  %v934_v20 = vmul.f32 %v909_v35, %v804_v61 }
 0x201   : > { %v944_v21 = vpack.c.bf16 %v936_v18, %v935_v62  ;;  %838 = vst.msk [vmem:[%s3197_s10 + $0x68] sm:$0xff] %vm824_vm2, %v820_v19 }
 0x202   : > { %v943_v22 = vpack.c.bf16 %v934_v20, %v933_v16 }
 0x203   : > { %956 = vst.msk [vmem:[%s3212_s27 + $0x38] sm:$0xff] %vm669_vm1, %v944_v21 }
 0x204   : > { %955 = vst.msk [vmem:[%s3212_s27 + $0x30] sm:$0xff] %vm669_vm1, %v943_v22 }
 0x205 PF: > { %p2339_p5 = scmp.ne.s32.totalorder %s2906_s17, 1 }
 0x206   : > { %v2921_v27 = vmov (!%p2339_p5), 0   ;;  %v3278_v50 = vld [vmem:[%s3075_s13 + $0x8] sm:$0xff] (!%p2339_p5)  ;;  %v961_v41 = vld [vmem:[%s3075_s13] sm:$0xff] (!%p2339_p5)  ;;  %v964_v49 = vld [vmem:[%s3075_s13 + $0x18] sm:$0xff] (!%p2339_p5)  ;;  %s3322_s12 = scalar_lea.vmem (!%p2339_p5), [#allocation2], %s3065_s29  ;;  %s1349_s21 = sshra.s32 (!%p2339_p5), %s3065_s29, 4 }
 0x207   : > { %960 = sbr.rel (%p2339_p5) target bundleno = 922 (0x39a), region = 68  ;;  %2821 = vset.pattern.permute.xlu1 (!%p2339_p5), %v2921_v27  ;;  %2820 = vset.pattern.permute.xlu0 (!%p2339_p5), %v2921_v27  ;;  %v3281_v28 = vld [vmem:[%s3075_s13 + $0x28] sm:$0xff] (!%p2339_p5)  ;;  %v970_v29 = vunpack.c.l.s8.bf16 (!%p2339_p5), %v3278_v50  ;;  %v965_v42 = vld [vmem:[%s3075_s13 + $0x20] sm:$0xff] (!%p2339_p5)  ;;  %v969_v44 = vunpack.c.l.s8.bf16 (!%p2339_p5), %v961_v41  ;;  %v972_v46 = vunpack.c.h.s8.bf16 (!%p2339_p5), %v3278_v50  ;;  %v968_v51 = vld [vmem:[%s3075_s13 + $0x38] sm:$0xff] (!%p2339_p5)  ;;  %v971_v52 = vunpack.c.h.s8.bf16 (!%p2339_p5), %v961_v41  ;;  %s2922_s24 = smov (!%p2339_p5), 32  }
 0x208   : > { %1127 = vperm.xlu1 (!%p2339_p5), %2821, %v3084_v2   ;;  %1117 = vperm.xlu0 (!%p2339_p5), %2820, %v3080_v0   ;;  %v978_v30 = vunpack.c.l.s8.bf16 (!%p2339_p5), %v3281_v28  ;;  %v977_v45 = vunpack.c.l.s8.bf16 (!%p2339_p5), %v965_v42  ;;  %v980_v48 = vunpack.c.h.s8.bf16 (!%p2339_p5), %v3281_v28  ;;  %v979_v53 = vunpack.c.h.s8.bf16 (!%p2339_p5), %v965_v42  ;;  %v963_v55 = vld [vmem:[%s3075_s13 + $0x10] sm:$0xff] (!%p2339_p5)  ;;  %v3335_v41 = vld [vmem:[%s3322_s12 + $0x48] sm:$0xff] (!%p2339_p5)  ;;  %s2340_s28 = sshll.u32 (!%p2339_p5), %s1349_s21, 3 }
 0x209   : > { %1033 = vmatprep.mubr.bf16.mxu0 (!%p2339_p5), %v970_v29  ;;  %v974_v54 = vunpack.c.l.s8.bf16 (!%p2339_p5), %v964_v49  ;;  %v982_v47 = vunpack.c.l.s8.bf16 (!%p2339_p5), %v968_v51  ;;  %v967_v56 = vld [vmem:[%s3075_s13 + $0x30] sm:$0xff] (!%p2339_p5)  ;;  %v973_v57 = vunpack.c.l.s8.bf16 (!%p2339_p5), %v963_v55  ;;  %v976_v59 = vunpack.c.h.s8.bf16 (!%p2339_p5), %v964_v49  ;;  %s3354_s30 = scalar_lea.vmem (!%p2339_p5), [#allocation4], %s2340_s28 }
 0x20a   : > { %1065 = vmatprep.mubr.bf16.mxu1 (!%p2339_p5), %v978_v30  ;;  %v981_v58 = vunpack.c.l.s8.bf16 (!%p2339_p5), %v967_v56  ;;  %v984_v60 = vunpack.c.h.s8.bf16 (!%p2339_p5), %v968_v51  ;;  %v975_v61 = vunpack.c.h.s8.bf16 (!%p2339_p5), %v963_v55  ;;  %v983_v62 = vunpack.c.h.s8.bf16 (!%p2339_p5), %v967_v56 }
 0x20b   : > { %v993_v23 = vld [vmem:[#allocation3 + $0x40] sm:$0xff] (!%p2339_p5)  ;;  %v994_v25 = vld [vmem:[#allocation3 + $0x48] sm:$0xff] (!%p2339_p5)  ;;  %v995_v17 = vld [vmem:[#allocation3 + $0x50] sm:$0xff] (!%p2339_p5)  ;;  %vm1291_vm3 = vcmask (!%p2339_p5), 261120   ;;  %vm1308_vm4 = vcmask (!%p2339_p5), 523264  }
 0x20c   : > { %v985_v24 = vld [vmem:[#allocation3] sm:$0xff] (!%p2339_p5)  ;;  %2401 = vmatprep.subr.bf16.mxu0 (!%p2339_p5), %v993_v23  ;;  %2707 = vmatprep.subr.bf16.mxu1 (!%p2339_p5), %v993_v23  ;;  %v986_v26 = vld [vmem:[#allocation3 + $0x8] sm:$0xff] (!%p2339_p5)  ;;  %v987_v31 = vld [vmem:[#allocation3 + $0x10] sm:$0xff] (!%p2339_p5) }
 0x20d   : > { %2402 = vmatpush3.bf16.msra.mxu0 (!%p2339_p5), %v985_v24  ;;  %2715 = vmatpush3.bf16.msra.mxu1 (!%p2339_p5), %v985_v24  ;;  %v996_v32 = vld [vmem:[#allocation3 + $0x58] sm:$0xff] (!%p2339_p5)  ;;  %v997_v34 = vld [vmem:[#allocation3 + $0x60] sm:$0xff] (!%p2339_p5)  ;;  %v998_v36 = vld [vmem:[#allocation3 + $0x68] sm:$0xff] (!%p2339_p5) }
 0x20e   : > { %2403 = vmatprep.subr.bf16.mxu0 %v994_v25  ;;  %2708 = vmatprep.subr.bf16.mxu1 %v994_v25  ;;  %v988_v33 = vld [vmem:[#allocation3 + $0x18] sm:$0xff]  ;;  %v989_v35 = vld [vmem:[#allocation3 + $0x20] sm:$0xff]  ;;  %v990_v37 = vld [vmem:[#allocation3 + $0x28] sm:$0xff] }
 0x20f   : > { %1132 = vperm.xlu1 %2821, %v3086_v3   ;;  %1122 = vperm.xlu0 %2820, %v3082_v1   ;;  %v999_v38 = vld [vmem:[#allocation3 + $0x70] sm:$0xff]  ;;  %v1000_v40 = vld [vmem:[#allocation3 + $0x78] sm:$0xff] }
 0x210   : > { %v991_v39 = vld [vmem:[#allocation3 + $0x30] sm:$0xff]  ;;  %v992_v43 = vld [vmem:[#allocation3 + $0x38] sm:$0xff] }
 0x211   : > { %2404 = vmatpush3.bf16.msra.mxu0 %v986_v26  ;;  %2716 = vmatpush3.bf16.msra.mxu1 %v986_v26 }
 0x212   : > { %2405 = vmatprep.subr.bf16.mxu0 %v995_v17  ;;  %2709 = vmatprep.subr.bf16.mxu1 %v995_v17 }
 0x213   : > { %1142 = vperm.xlu1 %2821, %v3090_v5   ;;  %1137 = vperm.xlu0 %2820, %v3088_v4  }
 0x215   : > { %2406 = vmatpush3.bf16.msra.mxu0 %v987_v31  ;;  %2717 = vmatpush3.bf16.msra.mxu1 %v987_v31 }
 0x216   : > { %2407 = vmatprep.subr.bf16.mxu0 %v996_v32  ;;  %2710 = vmatprep.subr.bf16.mxu1 %v996_v32 }
 0x217   : > { %1152 = vperm.xlu1 %2821, %v3094_v7   ;;  %1147 = vperm.xlu0 %2820, %v3092_v6  }
 0x219   : > { %2408 = vmatpush3.bf16.msra.mxu0 %v988_v33  ;;  %2718 = vmatpush3.bf16.msra.mxu1 %v988_v33  ;;  %v3325_v33 = vld [vmem:[%s3322_s12] sm:$0xff] }
 0x21a   : > { %2409 = vmatprep.subr.bf16.mxu0 %v997_v34  ;;  %2711 = vmatprep.subr.bf16.mxu1 %v997_v34 }
 0x21b   : > { %1162 = vperm.xlu1 %2821, %v3098_v9   ;;  %1157 = vperm.xlu0 %2820, %v3096_v8  }
 0x21d   : > { %2410 = vmatpush3.bf16.msra.mxu0 %v989_v35  ;;  %2719 = vmatpush3.bf16.msra.mxu1 %v989_v35 }
 0x21e   : > { %2411 = vmatprep.subr.bf16.mxu0 %v998_v36  ;;  %2712 = vmatprep.subr.bf16.mxu1 %v998_v36 }
 0x21f   : > { %1172 = vperm.xlu1 %2821, %v3102_v11   ;;  %1167 = vperm.xlu0 %2820, %v3100_v10  }
 0x221   : > { %2412 = vmatpush3.bf16.msra.mxu0 %v990_v37  ;;  %2720 = vmatpush3.bf16.msra.mxu1 %v990_v37 }
 0x222   : > { %2413 = vmatprep.subr.bf16.mxu0 %v999_v38  ;;  %2713 = vmatprep.subr.bf16.mxu1 %v999_v38  ;;  %v3328_v38 = vld [vmem:[%s3322_s12 + $0x40] sm:$0xff] }
 0x223   : > { %1182 = vperm.xlu1 %2821, %v3106_v13   ;;  %1177 = vperm.xlu0 %2820, %v3104_v12  }
 0x225   : > { %2414 = vmatpush3.bf16.msra.mxu0 %v991_v39  ;;  %2721 = vmatpush3.bf16.msra.mxu1 %v991_v39 }
 0x226   : > { %2415 = vmatprep.subr.bf16.mxu0 %v1000_v40  ;;  %2714 = vmatprep.subr.bf16.mxu1 %v1000_v40  ;;  %v3331_v40 = vld [vmem:[%s3322_s12 + $0x8] sm:$0xff] }
 0x227   : > { %1192 = vperm.xlu1 %2821, %v3110_v15   ;;  %1187 = vperm.xlu0 %2820, %v3108_v14  }
 0x229   : > { %2416 = vmatpush3.bf16.msra.mxu0 %v992_v43  ;;  %2722 = vmatpush3.bf16.msra.mxu1 %v992_v43 }
 0x22c   : > { %1034 = vmatmul.mubr.bf16.vlgmr.msra.gmra.mrb[0].mxu0 %v969_v44  ;;  %1066 = vmatmul.mubr.bf16.vlgmr.msra.gmra.mrb[0].mxu1 %v977_v45 }
 0x22d   : > { %1041 = vmatprep.mubr.bf16.mxu0 %v972_v46  ;;  %1073 = vmatprep.mubr.bf16.mxu1 %v980_v48 }
 0x234   : > { %1042 = vmatmul.mubr.bf16.gmra.mrb[4].mxu0 %v971_v52  ;;  %1074 = vmatmul.mubr.bf16.gmra.mrb[4].mxu1 %v979_v53 }
 0x235   : > { %1049 = vmatprep.mubr.bf16.mxu0 %v974_v54  ;;  %1081 = vmatprep.mubr.bf16.mxu1 %v982_v47 }
 0x23c   : > { %1050 = vmatmul.mubr.bf16.gmra.mrb[8].mxu0 %v973_v57  ;;  %1082 = vmatmul.mubr.bf16.gmra.mrb[8].mxu1 %v981_v58 }
 0x23d   : > { %1057 = vmatprep.mubr.bf16.mxu0 %v976_v59  ;;  %1089 = vmatprep.mubr.bf16.mxu1 %v984_v60 }
 0x244   : > { %1058 = vmatmul.mubr.bf16.gmra.mrb[12].mxu0 %v975_v61  ;;  %1090 = vmatmul.mubr.bf16.gmra.mrb[12].mxu1 %v983_v62 }
 0x287   : > { %v1118_v63 = vpop.permute.xlu0 %1117  ;;  %v3309_v18 = vpop.permute.xlu1 %1127 }
 0x28e   : > { %v1123_v16 = vpop.permute.xlu0 %1122  ;;  %v3311_v19 = vpop.permute.xlu1 %1132 }
 0x292   : > { %v3313_v20 = vpop.permute.xlu0 %1137  ;;  %v3315_v21 = vpop.permute.xlu1 %1142 }
 0x296   : > { %v3317_v22 = vpop.permute.xlu0 %1147  ;;  %v3319_v23 = vpop.permute.xlu1 %1152 }
 0x29a   : > { %v1158_v24 = vpop.permute.xlu0 %1157  ;;  %v1163_v39 = vpop.permute.xlu1 %1162 }
 0x29e   : > { %v1168_v45 = vpop.permute.xlu0 %1167 }
 0x2ff   : > { %v2417_v25 = vpop.f32.mrb[0].mxu0  ;;  %v2441_v26 = vpop.f32.mrb[0].mxu1 }
 0x300   : > { %v2418_v17 = vpop.f32.mrb[1].mxu0  ;;  %v2442_v27 = vpop.f32.mrb[1].mxu1 }
 0x301   : > { %v2419_v50 = vadd.f32 %v2418_v17, %v2417_v25  ;;  %v2443_v28 = vadd.f32 %v2442_v27, %v2441_v26  ;;  %v2420_v29 = vpop.f32.mrb[2].mxu0  ;;  %v2444_v30 = vpop.f32.mrb[2].mxu1  ;;  %v3344_v26 = vld [vmem:[%s3322_s12 + $0x10] sm:$0xff] }
 0x302   : > { %v2421_v31 = vpop.f32.mrb[3].mxu0  ;;  %v2445_v32 = vpop.f32.mrb[3].mxu1 }
 0x303   : > { %v1195_v34 = vmul.f32 %v2419_v50, %v1118_v63  ;;  %v1203_v35 = vmul.f32 %v2443_v28, %v1158_v24  ;;  %v2422_v36 = vadd.f32 %v2421_v31, %v2420_v29  ;;  %v2446_v37 = vadd.f32 %v2445_v32, %v2444_v30  ;;  %v3349_v28 = vld [vmem:[%s3322_s12 + $0x50] sm:$0xff]  ;;  %v1173_v31 = vpop.permute.xlu1 %1172 }
 0x305   : > { %v1196_v42 = vmul.f32 %v2422_v36, %v1123_v16  ;;  %v1204_v43 = vmul.f32 %v2446_v37, %v1163_v39  ;;  %v1211_v44 = vsub.f32 %v3325_v33, %v1195_v34  ;;  %v1219_v46 = vsub.f32 %v3328_v38, %v1203_v35  ;;  %v3362_v34 = vld [vmem:[%s3322_s12 + $0x58] sm:$0xff]  ;;  %v1178_v35 = vpop.permute.xlu0 %1177 }
 0x307   : > { %v2423_v48 = vpop.f32.mrb[4].mxu0  ;;  %v2447_v49 = vpop.f32.mrb[4].mxu1  ;;  %1243 = vrot.lane.b32.xlu0 %v1211_v44, %s2922_s24  ;;  %v1212_v51 = vsub.f32 %v3331_v40, %v1196_v42  ;;  %v1220_v52 = vsub.f32 %v3335_v41, %v1204_v43  ;;  %v1325_v53 = vmul.f32 %v1211_v44, %v1118_v63  ;;  %v1333_v25 = vmul.f32 %v1219_v46, %v1158_v24 }
 0x308   : > { %v2424_v54 = vpop.f32.mrb[5].mxu0  ;;  %v2448_v47 = vpop.f32.mrb[5].mxu1 }
 0x309   : > { %v2425_v55 = vadd.f32 %v2424_v54, %v2423_v48  ;;  %v2449_v56 = vadd.f32 %v2448_v47, %v2447_v49  ;;  %v2426_v57 = vpop.f32.mrb[6].mxu0  ;;  %v2450_v58 = vpop.f32.mrb[6].mxu1  ;;  %1245 = vrot.lane.b32.xlu1 %v1212_v51, %s2922_s24  ;;  %v1326_v59 = vmul.f32 %v1212_v51, %v1123_v16  ;;  %v1334_v60 = vmul.f32 %v1220_v52, %v1163_v39  ;;  %v3352_v16 = vld [vmem:[%s3322_s12 + $0x18] sm:$0xff] }
 0x30a   : > { %v2427_v61 = vpop.f32.mrb[7].mxu0  ;;  %v2451_v62 = vpop.f32.mrb[7].mxu1 }
 0x30b   : > { %v1197_v63 = vmul.f32 %v2425_v55, %v3309_v18  ;;  %v1205_v17 = vmul.f32 %v2449_v56, %v1168_v45  ;;  %v1341_v27 = vpack.c.bf16 %v1326_v59, %v1325_v53  ;;  %v2428_v50 = vadd.f32 %v2427_v61, %v2426_v57  ;;  %1259 = vrot.lane.b32.xlu0 %v1219_v46, %s2922_s24  ;;  %v3374_v59 = vld [vmem:[%s3322_s12 + $0x20] sm:$0xff] }
 0x30c   : > { %v2452_v29 = vadd.f32 %v2451_v62, %v2450_v58  ;;  %v1345_v30 = vpack.c.bf16 %v1334_v60, %v1333_v25  ;;  %v3379_v25 = vld [vmem:[%s3322_s12 + $0x60] sm:$0xff] }
 0x30d   : > { %1353 = vst.msk [vmem:[%s3354_s30] sm:$0xff] %vm1291_vm3, %v1341_v27  ;;  %v1198_v24 = vmul.f32 %v2428_v50, %v3311_v19  ;;  %1261 = vrot.lane.b32.xlu1 %v1220_v52, %s2922_s24  ;;  %v1213_v32 = vsub.f32 %v3344_v26, %v1197_v63  ;;  %v1221_v37 = vsub.f32 %v3349_v28, %v1205_v17  ;;  %v3382_v17 = vld [vmem:[%s3322_s12 + $0x28] sm:$0xff]  ;;  %v1183_v27 = vpop.permute.xlu1 %1182 }
 0x30e   : > { %v1206_v36 = vmul.f32 %v2452_v29, %v1173_v31  ;;  %1357 = vst.msk [vmem:[%s3354_s30 + $0x20] sm:$0xff] %vm1291_vm3, %v1345_v30  ;;  %v3390_v29 = vld [vmem:[%s3322_s12 + $0x68] sm:$0xff]  ;;  %v1188_v30 = vpop.permute.xlu0 %1187 }
 0x30f   : > { %v2429_v39 = vpop.f32.mrb[8].mxu0  ;;  %v2453_v42 = vpop.f32.mrb[8].mxu1  ;;  %1247 = vrot.lane.b32.xlu0 %v1213_v32, %s2922_s24  ;;  %v1214_v43 = vsub.f32 %v3352_v16, %v1198_v24  ;;  %v1327_v49 = vmul.f32 %v1213_v32, %v3309_v18  ;;  %v1335_v57 = vmul.f32 %v1221_v37, %v1168_v45 }
 0x310   : > { %v2430_v44 = vpop.f32.mrb[9].mxu0  ;;  %v2454_v46 = vpop.f32.mrb[9].mxu1  ;;  %v1222_v48 = vsub.f32 %v3362_v34, %v1206_v36 }
 0x311   : > { %v2431_v51 = vadd.f32 %v2430_v44, %v2429_v39  ;;  %v2455_v52 = vadd.f32 %v2454_v46, %v2453_v42  ;;  %v2432_v53 = vpop.f32.mrb[10].mxu0  ;;  %v2456_v54 = vpop.f32.mrb[10].mxu1  ;;  %v1328_v47 = vmul.f32 %v1214_v43, %v3311_v19  ;;  %1249 = vrot.lane.b32.xlu1 %v1214_v43, %s2922_s24 }
 0x312   : > { %v2433_v55 = vpop.f32.mrb[11].mxu0  ;;  %v2457_v56 = vpop.f32.mrb[11].mxu1  ;;  %v1336_v58 = vmul.f32 %v1222_v48, %v1173_v31 }
 0x313   : > { %v1199_v18 = vmul.f32 %v2431_v51, %v3313_v20  ;;  %v1207_v60 = vmul.f32 %v2455_v52, %v1178_v35  ;;  %v1342_v61 = vpack.c.bf16 %v1328_v47, %v1327_v49  ;;  %v2434_v62 = vadd.f32 %v2433_v55, %v2432_v53  ;;  %1263 = vrot.lane.b32.xlu0 %v1221_v37, %s2922_s24 }
 0x314   : > { %v2458_v19 = vadd.f32 %v2457_v56, %v2456_v54  ;;  %v1346_v63 = vpack.c.bf16 %v1336_v58, %v1335_v57  ;;  %v3402_v56 = vld [vmem:[%s3322_s12 + $0x30] sm:$0xff] }
 0x315   : > { %1354 = vst.msk [vmem:[%s3354_s30 + $0x8] sm:$0xff] %vm1291_vm3, %v1342_v61  ;;  %v1200_v45 = vmul.f32 %v2434_v62, %v3315_v21  ;;  %1265 = vrot.lane.b32.xlu1 %v1222_v48, %s2922_s24  ;;  %v1215_v50 = vsub.f32 %v3374_v59, %v1199_v18  ;;  %v1223_v24 = vsub.f32 %v3379_v25, %v1207_v60  ;;  %v3407_v60 = vld [vmem:[%s3322_s12 + $0x70] sm:$0xff]  ;;  %v3410_v62 = vld [vmem:[%s3322_s12 + $0x38] sm:$0xff] }
 0x316   : > { %v1208_v31 = vmul.f32 %v2458_v19, %v1183_v27  ;;  %1358 = vst.msk [vmem:[%s3354_s30 + $0x28] sm:$0xff] %vm1291_vm3, %v1346_v63  ;;  %v1193_v19 = vpop.permute.xlu1 %1192 }
 0x317   : > { %v2435_v32 = vpop.f32.mrb[12].mxu0  ;;  %v2459_v36 = vpop.f32.mrb[12].mxu1  ;;  %1251 = vrot.lane.b32.xlu0 %v1215_v50, %s2922_s24  ;;  %v1216_v37 = vsub.f32 %v3382_v17, %v1200_v45  ;;  %v1329_v44 = vmul.f32 %v1215_v50, %v3313_v20  ;;  %v1337_v47 = vmul.f32 %v1223_v24, %v1178_v35 }
 0x318   : > { %v2436_v39 = vpop.f32.mrb[13].mxu0  ;;  %v2460_v42 = vpop.f32.mrb[13].mxu1  ;;  %v1224_v43 = vsub.f32 %v3390_v29, %v1208_v31 }
 0x319   : > { %v2437_v46 = vadd.f32 %v2436_v39, %v2435_v32  ;;  %v2461_v48 = vadd.f32 %v2460_v42, %v2459_v36  ;;  %v2438_v49 = vpop.f32.mrb[14].mxu0  ;;  %v2462_v51 = vpop.f32.mrb[14].mxu1  ;;  %v1330_v52 = vmul.f32 %v1216_v37, %v3315_v21  ;;  %1253 = vrot.lane.b32.xlu1 %v1216_v37, %s2922_s24 }
 0x31a   : > { %v2439_v53 = vpop.f32.mrb[15].mxu0  ;;  %v2463_v54 = vpop.f32.mrb[15].mxu1  ;;  %v1338_v55 = vmul.f32 %v1224_v43, %v1183_v27  ;;  %v3418_v27 = vld [vmem:[%s3322_s12 + $0x78] sm:$0xff] }
 0x31b   : > { %v1201_v20 = vmul.f32 %v2437_v46, %v3317_v22  ;;  %v1209_v57 = vmul.f32 %v2461_v48, %v1188_v30  ;;  %v1343_v58 = vpack.c.bf16 %v1330_v52, %v1329_v44  ;;  %v2440_v18 = vadd.f32 %v2439_v53, %v2438_v49  ;;  %1267 = vrot.lane.b32.xlu0 %v1223_v24, %s2922_s24 }
 0x31c   : > { %v2464_v21 = vadd.f32 %v2463_v54, %v2462_v51  ;;  %v1347_v61 = vpack.c.bf16 %v1338_v55, %v1337_v47 }
 0x31d   : > { %1355 = vst.msk [vmem:[%s3354_s30 + $0x10] sm:$0xff] %vm1291_vm3, %v1343_v58  ;;  %v1202_v35 = vmul.f32 %v2440_v18, %v3319_v23  ;;  %1269 = vrot.lane.b32.xlu1 %v1224_v43, %s2922_s24  ;;  %v1217_v63 = vsub.f32 %v3402_v56, %v1201_v20  ;;  %v1225_v50 = vsub.f32 %v3407_v60, %v1209_v57 }
 0x31e   : > { %v1210_v45 = vmul.f32 %v2464_v21, %v1193_v19  ;;  %1359 = vst.msk [vmem:[%s3354_s30 + $0x30] sm:$0xff] %vm1291_vm3, %v1347_v61 }
 0x31f   : > { %1255 = vrot.lane.b32.xlu0 %v1217_v63, %s2922_s24  ;;  %v1218_v31 = vsub.f32 %v3410_v62, %v1202_v35  ;;  %v1331_v32 = vmul.f32 %v1217_v63, %v3317_v22  ;;  %v1339_v37 = vmul.f32 %v1225_v50, %v1188_v30 }
 0x320   : > { %v1226_v24 = vsub.f32 %v3418_v27, %v1210_v45 }
 0x321   : > { %v1332_v36 = vmul.f32 %v1218_v31, %v3319_v23  ;;  %1257 = vrot.lane.b32.xlu1 %v1218_v31, %s2922_s24 }
 0x322   : > { %v1340_v39 = vmul.f32 %v1226_v24, %v1193_v19 }
 0x323   : > { %v1344_v42 = vpack.c.bf16 %v1332_v36, %v1331_v32  ;;  %1271 = vrot.lane.b32.xlu0 %v1225_v50, %s2922_s24 }
 0x324   : > { %v1348_v43 = vpack.c.bf16 %v1340_v39, %v1339_v37 }
 0x325   : > { %1356 = vst.msk [vmem:[%s3354_s30 + $0x18] sm:$0xff] %vm1291_vm3, %v1344_v42  ;;  %1273 = vrot.lane.b32.xlu1 %v1226_v24, %s2922_s24 }
 0x326   : > { %1360 = vst.msk [vmem:[%s3354_s30 + $0x38] sm:$0xff] %vm1291_vm3, %v1348_v43 }
 0x379   : > { %v1244_v22 = vpop.permute.xlu0 %1243 }
 0x37a   : > { %v1292_v23 = vsel %vm1291_vm3, %v3325_v33, %v1244_v22 }
 0x37b   : > { %1309 = vst.msk [vmem:[%s3322_s12] sm:$0xff] %vm1308_vm4, %v1292_v23  ;;  %v1246_v30 = vpop.permute.xlu1 %1245 }
 0x37c   : > { %v1293_v44 = vsel %vm1291_vm3, %v3331_v40, %v1246_v30 }
 0x37d   : > { %1310 = vst.msk [vmem:[%s3322_s12 + $0x8] sm:$0xff] %vm1308_vm4, %v1293_v44  ;;  %v1260_v46 = vpop.permute.xlu0 %1259 }
 0x37e   : > { %v1300_v48 = vsel %vm1291_vm3, %v3328_v38, %v1260_v46 }
 0x37f   : > { %1317 = vst.msk [vmem:[%s3322_s12 + $0x40] sm:$0xff] %vm1308_vm4, %v1300_v48  ;;  %v1262_v49 = vpop.permute.xlu1 %1261 }
 0x380   : > { %v1301_v33 = vsel %vm1291_vm3, %v3335_v41, %v1262_v49 }
 0x381   : > { %1318 = vst.msk [vmem:[%s3322_s12 + $0x48] sm:$0xff] %vm1308_vm4, %v1301_v33  ;;  %v1248_v51 = vpop.permute.xlu0 %1247 }
 0x382   : > { %v1294_v40 = vsel %vm1291_vm3, %v3344_v26, %v1248_v51 }
 0x383   : > { %1311 = vst.msk [vmem:[%s3322_s12 + $0x10] sm:$0xff] %vm1308_vm4, %v1294_v40  ;;  %v1250_v52 = vpop.permute.xlu1 %1249 }
 0x384   : > { %v1295_v38 = vsel %vm1291_vm3, %v3352_v16, %v1250_v52 }
 0x385   : > { %1312 = vst.msk [vmem:[%s3322_s12 + $0x18] sm:$0xff] %vm1308_vm4, %v1295_v38  ;;  %v1264_v53 = vpop.permute.xlu0 %1263 }
 0x386   : > { %v1302_v41 = vsel %vm1291_vm3, %v3349_v28, %v1264_v53 }
 0x387   : > { %1319 = vst.msk [vmem:[%s3322_s12 + $0x50] sm:$0xff] %vm1308_vm4, %v1302_v41  ;;  %v1266_v54 = vpop.permute.xlu1 %1265 }
 0x388   : > { %v1303_v26 = vsel %vm1291_vm3, %v3362_v34, %v1266_v54 }
 0x389   : > { %1320 = vst.msk [vmem:[%s3322_s12 + $0x58] sm:$0xff] %vm1308_vm4, %v1303_v26  ;;  %v1252_v47 = vpop.permute.xlu0 %1251 }
 0x38a   : > { %v1296_v16 = vsel %vm1291_vm3, %v3374_v59, %v1252_v47 }
 0x38b   : > { %1313 = vst.msk [vmem:[%s3322_s12 + $0x20] sm:$0xff] %vm1308_vm4, %v1296_v16  ;;  %v1254_v55 = vpop.permute.xlu1 %1253 }
 0x38c   : > { %v1297_v28 = vsel %vm1291_vm3, %v3382_v17, %v1254_v55 }
 0x38d   : > { %1314 = vst.msk [vmem:[%s3322_s12 + $0x28] sm:$0xff] %vm1308_vm4, %v1297_v28  ;;  %v1268_v20 = vpop.permute.xlu0 %1267 }
 0x38e   : > { %v1304_v34 = vsel %vm1291_vm3, %v3379_v25, %v1268_v20 }
 0x38f   : > { %1321 = vst.msk [vmem:[%s3322_s12 + $0x60] sm:$0xff] %vm1308_vm4, %v1304_v34  ;;  %v1270_v57 = vpop.permute.xlu1 %1269 }
 0x390   : > { %v1305_v59 = vsel %vm1291_vm3, %v3390_v29, %v1270_v57 }
 0x391   : > { %1322 = vst.msk [vmem:[%s3322_s12 + $0x68] sm:$0xff] %vm1308_vm4, %v1305_v59  ;;  %v1256_v58 = vpop.permute.xlu0 %1255 }
 0x392   : > { %v1298_v17 = vsel %vm1291_vm3, %v3402_v56, %v1256_v58 }
 0x393   : > { %1315 = vst.msk [vmem:[%s3322_s12 + $0x30] sm:$0xff] %vm1308_vm4, %v1298_v17  ;;  %v1258_v18 = vpop.permute.xlu1 %1257 }
 0x394   : > { %v1299_v21 = vsel %vm1291_vm3, %v3410_v62, %v1258_v18 }
 0x395   : > { %1316 = vst.msk [vmem:[%s3322_s12 + $0x38] sm:$0xff] %vm1308_vm4, %v1299_v21  ;;  %v1272_v25 = vpop.permute.xlu0 %1271 }
 0x396   : > { %v1306_v61 = vsel %vm1291_vm3, %v3407_v60, %v1272_v25 }
 0x397   : > { %1323 = vst.msk [vmem:[%s3322_s12 + $0x70] sm:$0xff] %vm1308_vm4, %v1306_v61  ;;  %v1274_v29 = vpop.permute.xlu1 %1273 }
 0x398   : > { %v1307_v19 = vsel %vm1291_vm3, %v3418_v27, %v1274_v29 }
 0x399   : > { %1324 = vst.msk [vmem:[%s3322_s12 + $0x78] sm:$0xff] %vm1308_vm4, %v1307_v19 }
 0x39a PF: > { %p2341_p6 = scmp.ne.s32.totalorder %s2906_s17, 2 }
 0x39b   : > { %v1397_v56 = vld [vmem:[#allocation4 + $0x40] sm:$0xff] (!%p2341_p6)  ;;  %v1398_v35 = vld [vmem:[#allocation4 + $0x48] sm:$0xff] (!%p2341_p6)  ;;  %v2923_v63 = vmov (!%p2341_p6), 0   ;;  %v1399_v27 = vld [vmem:[#allocation4 + $0x50] sm:$0xff] (!%p2341_p6)  ;;  %s2924_s11 = smov (!%p2341_p6), 32   ;;  %s3553_s27 = scalar_lea.vmem (!%p2341_p6), [#allocation2], %s3065_s29 }
 0x39c   : > { %1364 = sbr.rel (%p2341_p6) target bundleno = 1713 (0x6b1), region = 72  ;;  %v1389_v62 = vld [vmem:[#allocation4] sm:$0xff] (!%p2341_p6)  ;;  %2465 = vmatprep.subr.bf16.mxu0 (!%p2341_p6), %v1397_v56  ;;  %2822 = vset.pattern.permute.xlu0 (!%p2341_p6), %v2923_v63  ;;  %v1390_v60 = vld [vmem:[#allocation4 + $0x8] sm:$0xff] (!%p2341_p6)  ;;  %v1391_v31 = vld [vmem:[#allocation4 + $0x10] sm:$0xff] (!%p2341_p6)  ;;  %s2925_s12 = smov (!%p2341_p6), 96   ;;  %vm1755_vm5 = vcmask (!%p2341_p6), 261120  }
 0x39d   : > { %2466 = vmatpush3.bf16.msra.mxu0 (!%p2341_p6), %v1389_v62  ;;  %1521 = vperm.xlu0 (!%p2341_p6), %2822, %v3080_v0   ;;  %v1366_v45 = vld [vmem:[%s3075_s13 + $0x8] sm:$0xff] (!%p2341_p6)  ;;  %v1400_v24 = vld [vmem:[#allocation4 + $0x58] sm:$0xff] (!%p2341_p6)  ;;  %v1401_v32 = vld [vmem:[#allocation4 + $0x60] sm:$0xff] (!%p2341_p6)  ;;  %vm1933_vm6 = vcmask (!%p2341_p6), 523264  }
 0x39e   : > { %2467 = vmatprep.subr.bf16.mxu0 (!%p2341_p6), %v1398_v35  ;;  %2823 = vset.pattern.permute.xlu1 (!%p2341_p6), %v2923_v63  ;;  %v1374_v50 = vunpack.c.l.s8.bf16 (!%p2341_p6), %v1366_v45  ;;  %v1392_v0 = vld [vmem:[#allocation4 + $0x18] sm:$0xff] (!%p2341_p6)  ;;  %v1365_v36 = vld [vmem:[%s3075_s13] sm:$0xff] (!%p2341_p6)  ;;  %v1370_v42 = vld [vmem:[%s3075_s13 + $0x28] sm:$0xff] (!%p2341_p6) }
 0x39f   : > { %1531 = vperm.xlu1 (!%p2341_p6), %2823, %v3084_v2   ;;  %v1393_v2 = vld [vmem:[#allocation4 + $0x20] sm:$0xff] (!%p2341_p6)  ;;  %v1384_v23 = vunpack.c.h.s8.bf16 (!%p2341_p6), %v1370_v42  ;;  %v1372_v30 = vld [vmem:[%s3075_s13 + $0x38] sm:$0xff] (!%p2341_p6)  ;;  %v1371_v48 = vld [vmem:[%s3075_s13 + $0x30] sm:$0xff] (!%p2341_p6) }
 0x3a0   : > { %1437 = vmatprep.mubr.bf16.mxu0 (!%p2341_p6), %v1374_v50  ;;  %v1386_v46 = vunpack.c.l.s8.bf16 (!%p2341_p6), %v1372_v30  ;;  %v1385_v49 = vunpack.c.l.s8.bf16 (!%p2341_p6), %v1371_v48  ;;  %v1388_v33 = vunpack.c.h.s8.bf16 (!%p2341_p6), %v1372_v30  ;;  %v1387_v51 = vunpack.c.h.s8.bf16 (!%p2341_p6), %v1371_v48 }
 0x3a1   : > { %2468 = vmatpush3.bf16.msra.mxu0 (!%p2341_p6), %v1390_v60  ;;  %1526 = vperm.xlu0 (!%p2341_p6), %2822, %v3082_v1   ;;  %v1402_v1 = vld [vmem:[#allocation4 + $0x68] sm:$0xff] (!%p2341_p6) }
 0x3a2   : > { %2469 = vmatprep.subr.bf16.mxu0 (!%p2341_p6), %v1399_v27 }
 0x3a3   : > { %1536 = vperm.xlu1 %2823, %v3086_v3   ;;  %v1394_v3 = vld [vmem:[#allocation4 + $0x28] sm:$0xff] }
 0x3a5   : > { %2470 = vmatpush3.bf16.msra.mxu0 %v1391_v31  ;;  %1541 = vperm.xlu0 %2822, %v3088_v4   ;;  %v1403_v4 = vld [vmem:[#allocation4 + $0x70] sm:$0xff] }
 0x3a6   : > { %2471 = vmatprep.subr.bf16.mxu0 %v1400_v24 }
 0x3a7   : > { %1546 = vperm.xlu1 %2823, %v3090_v5   ;;  %v1395_v5 = vld [vmem:[#allocation4 + $0x30] sm:$0xff] }
 0x3a9   : > { %2472 = vmatpush3.bf16.msra.mxu0 %v1392_v0  ;;  %1551 = vperm.xlu0 %2822, %v3092_v6   ;;  %v1404_v6 = vld [vmem:[#allocation4 + $0x78] sm:$0xff] }
 0x3aa   : > { %2473 = vmatprep.subr.bf16.mxu0 %v1401_v32 }
 0x3ab   : > { %1556 = vperm.xlu1 %2823, %v3094_v7   ;;  %v1396_v7 = vld [vmem:[#allocation4 + $0x38] sm:$0xff] }
 0x3ad   : > { %2474 = vmatpush3.bf16.msra.mxu0 %v1393_v2  ;;  %1561 = vperm.xlu0 %2822, %v3096_v8   ;;  %v1373_v8 = vunpack.c.l.s8.bf16 %v1365_v36 }
 0x3ae   : > { %2475 = vmatprep.subr.bf16.mxu0 %v1402_v1 }
 0x3af   : > { %1566 = vperm.xlu1 %2823, %v3098_v9   ;;  %v1376_v9 = vunpack.c.h.s8.bf16 %v1366_v45 }
 0x3b1   : > { %2476 = vmatpush3.bf16.msra.mxu0 %v1394_v3  ;;  %1571 = vperm.xlu0 %2822, %v3100_v10   ;;  %v1368_v10 = vld [vmem:[%s3075_s13 + $0x18] sm:$0xff] }
 0x3b2   : > { %2477 = vmatprep.subr.bf16.mxu0 %v1403_v4  ;;  %v1378_v37 = vunpack.c.l.s8.bf16 %v1368_v10 }
 0x3b3   : > { %1576 = vperm.xlu1 %2823, %v3102_v11   ;;  %v1375_v11 = vunpack.c.h.s8.bf16 %v1365_v36 }
 0x3b5   : > { %2478 = vmatpush3.bf16.msra.mxu0 %v1395_v5  ;;  %1581 = vperm.xlu0 %2822, %v3104_v12   ;;  %v1367_v12 = vld [vmem:[%s3075_s13 + $0x10] sm:$0xff] }
 0x3b6   : > { %2479 = vmatprep.subr.bf16.mxu0 %v1404_v6  ;;  %v1377_v39 = vunpack.c.l.s8.bf16 %v1367_v12  ;;  %v1379_v43 = vunpack.c.h.s8.bf16 %v1367_v12 }
 0x3b7   : > { %1586 = vperm.xlu1 %2823, %v3106_v13   ;;  %v1380_v13 = vunpack.c.h.s8.bf16 %v1368_v10 }
 0x3b9   : > { %2480 = vmatpush3.bf16.msra.mxu0 %v1396_v7  ;;  %1591 = vperm.xlu0 %2822, %v3108_v14   ;;  %v1382_v14 = vunpack.c.l.s8.bf16 %v1370_v42 }
 0x3bb   : > { %1596 = vperm.xlu1 %2823, %v3110_v15   ;;  %v1369_v15 = vld [vmem:[%s3075_s13 + $0x20] sm:$0xff] }
 0x3bc   : > { %1438 = vmatmul.mubr.bf16.vlgmr.msra.gmra.mrb[0].mxu0 %v1373_v8  ;;  %v1381_v22 = vunpack.c.l.s8.bf16 %v1369_v15  ;;  %v1383_v44 = vunpack.c.h.s8.bf16 %v1369_v15 }
 0x3bd   : > { %1445 = vmatprep.mubr.bf16.mxu0 %v1376_v9 }
 0x3c4   : > { %1446 = vmatmul.mubr.bf16.gmra.mrb[4].mxu0 %v1375_v11 }
 0x3c5   : > { %1453 = vmatprep.mubr.bf16.mxu0 %v1378_v37 }
 0x3cc   : > { %1454 = vmatmul.mubr.bf16.gmra.mrb[8].mxu0 %v1377_v39 }
 0x3cd   : > { %1461 = vmatprep.mubr.bf16.mxu0 %v1380_v13 }
 0x3d4   : > { %1462 = vmatmul.mubr.bf16.gmra.mrb[12].mxu0 %v1379_v43 }
 0x3d5   : > { %1469 = vmatprep.mubr.bf16.mxu0 %v1382_v14 }
 0x3dc   : > { %1470 = vmatmul.mubr.bf16.gmra.mrb[16].mxu0 %v1381_v22 }
 0x3dd   : > { %1477 = vmatprep.mubr.bf16.mxu0 %v1384_v23 }
 0x3e4   : > { %1478 = vmatmul.mubr.bf16.gmra.mrb[20].mxu0 %v1383_v44 }
 0x3e5   : > { %1485 = vmatprep.mubr.bf16.mxu0 %v1386_v46 }
 0x3ec   : > { %1486 = vmatmul.mubr.bf16.gmra.mrb[24].mxu0 %v1385_v49 }
 0x3ed   : > { %1493 = vmatprep.mubr.bf16.mxu0 %v1388_v33 }
 0x3f4   : > { %1494 = vmatmul.mubr.bf16.gmra.mrb[28].mxu0 %v1387_v51 }
 0x41c   : > { %v1522_v40 = vpop.permute.xlu0 %1521 }
 0x41e   : > { %v1532_v28 = vpop.permute.xlu1 %1531 }
 0x420   : > { %v1527_v26 = vpop.permute.xlu0 %1526 }
 0x422   : > { %v1537_v21 = vpop.permute.xlu1 %1536 }
 0x424   : > { %v1542_v62 = vpop.permute.xlu0 %1541 }
 0x426   : > { %v1547_v27 = vpop.permute.xlu1 %1546 }
 0x428   : > { %v1552_v32 = vpop.permute.xlu0 %1551 }
 0x42a   : > { %v1557_v4 = vpop.permute.xlu1 %1556 }
 0x42c   : > { %v1562_v9 = vpop.permute.xlu0 %1561 }
 0x42e   : > { %v1567_v12 = vpop.permute.xlu1 %1566 }
 0x430   : > { %v1572_v15 = vpop.permute.xlu0 %1571 }
 0x432   : > { %v1577_v44 = vpop.permute.xlu1 %1576 }
 0x48f   : > { %v2481_v52 = vpop.f32.mrb[0].mxu0 }
 0x490   : > { %v2482_v38 = vpop.f32.mrb[1].mxu0 }
 0x491   : > { %v2483_v53 = vadd.f32 %v2482_v38, %v2481_v52  ;;  %v2484_v41 = vpop.f32.mrb[2].mxu0 }
 0x492   : > { %v2485_v54 = vpop.f32.mrb[3].mxu0 }
 0x493   : > { %v1599_v47 = vmul.f32 %v2483_v53, %v1522_v40  ;;  %v2486_v16 = vadd.f32 %v2485_v54, %v2484_v41  ;;  %v1582_v40 = vpop.permute.xlu0 %1581  ;;  %v1587_v41 = vpop.permute.xlu1 %1586  ;;  %v1703_v54 = vld [vmem:[%s3798_s8] sm:$0xff] }
 0x495   : > { %v1600_v55 = vmul.f32 %v2486_v16, %v1527_v26  ;;  %1631 = vrot.lane.b32.xlu0 %v1599_v47, %s2924_s11  ;;  %v1704_v26 = vld [vmem:[%s3798_s8 + $0x8] sm:$0xff]  ;;  %v1705_v47 = vld [vmem:[%s3798_s8 + $0x10] sm:$0xff] }
 0x497   : > { %v2487_v20 = vpop.f32.mrb[4].mxu0  ;;  %1633 = vrot.lane.b32.xlu1 %v1600_v55, %s2924_s11  ;;  %v2683_v55 = vpack.c.bf16 %v1704_v26, %v1703_v54  ;;  %v3635_v54 = vld [vmem:[%s3553_s27 + $0x78] sm:$0xff] }
 0x498   : > { %v2488_v34 = vpop.f32.mrb[5].mxu0 }
 0x499   : > { %v2489_v57 = vadd.f32 %v2488_v34, %v2487_v20  ;;  %v2490_v59 = vpop.f32.mrb[6].mxu0  ;;  %2684 = vmatprep.subr.bf16.mxu1 %v2683_v55 }
 0x49a   : > { %v2491_v58 = vpop.f32.mrb[7].mxu0  ;;  %2686 = vmatpush3.bf16.msra.mxu1 %v2683_v55  ;;  %v1697_v55 = vld [vmem:[%s3797_s7 + $0x10] sm:$0xff] }
 0x49b   : > { %v1601_v17 = vmul.f32 %v2489_v57, %v1532_v28  ;;  %v2492_v18 = vadd.f32 %v2491_v58, %v2490_v59  ;;  %v1706_v28 = vld [vmem:[%s3798_s8 + $0x18] sm:$0xff] }
 0x49c   : > { %v2687_v20 = vpack.c.bf16 %v1706_v28, %v1705_v47  ;;  %v1698_v28 = vld [vmem:[%s3797_s7 + $0x18] sm:$0xff] }
 0x49d   : > { %v1602_v25 = vmul.f32 %v2492_v18, %v1537_v21  ;;  %1635 = vrot.lane.b32.xlu0 %v1601_v17, %s2924_s11  ;;  %v1592_v17 = vpop.permute.xlu0 %1591 }
 0x49e   : > { %2688 = vmatprep.subr.bf16.mxu1 %v2687_v20 }
 0x49f   : > { %v2493_v61 = vpop.f32.mrb[8].mxu0  ;;  %1637 = vrot.lane.b32.xlu1 %v1602_v25, %s2924_s11  ;;  %2690 = vmatpush3.bf16.msra.mxu1 %v2687_v20 }
 0x4a0   : > { %v2494_v29 = vpop.f32.mrb[9].mxu0 }
 0x4a1   : > { %v2495_v19 = vadd.f32 %v2494_v29, %v2493_v61  ;;  %v2496_v56 = vpop.f32.mrb[10].mxu0  ;;  %v1597_v61 = vpop.permute.xlu1 %1596 }
 0x4a2   : > { %v2497_v35 = vpop.f32.mrb[11].mxu0 }
 0x4a3   : > { %v1603_v63 = vmul.f32 %v2495_v19, %v1542_v62  ;;  %v2498_v60 = vadd.f32 %v2497_v35, %v2496_v56  ;;  %v3556_v19 = vld [vmem:[%s3553_s27] sm:$0xff]  ;;  %v3559_v62 = vld [vmem:[%s3553_s27 + $0x8] sm:$0xff] }
 0x4a5   : > { %v1604_v45 = vmul.f32 %v2498_v60, %v1547_v27  ;;  %1639 = vrot.lane.b32.xlu0 %v1603_v63, %s2924_s11  ;;  %v3566_v27 = vld [vmem:[%s3553_s27 + $0x10] sm:$0xff] }
 0x4a7   : > { %v2499_v50 = vpop.f32.mrb[12].mxu0  ;;  %1641 = vrot.lane.b32.xlu1 %v1604_v45, %s2924_s11 }
 0x4a8   : > { %v2500_v31 = vpop.f32.mrb[13].mxu0 }
 0x4a9   : > { %v2501_v24 = vadd.f32 %v2500_v31, %v2499_v50  ;;  %v2502_v0 = vpop.f32.mrb[14].mxu0  ;;  %v3569_v50 = vld [vmem:[%s3553_s27 + $0x18] sm:$0xff] }
 0x4aa   : > { %v2503_v2 = vpop.f32.mrb[15].mxu0 }
 0x4ab   : > { %v1605_v1 = vmul.f32 %v2501_v24, %v1552_v32  ;;  %v2504_v3 = vadd.f32 %v2503_v2, %v2502_v0  ;;  %v3576_v32 = vld [vmem:[%s3553_s27 + $0x20] sm:$0xff] }
 0x4ad   : > { %v1606_v5 = vmul.f32 %v2504_v3, %v1557_v4  ;;  %1643 = vrot.lane.b32.xlu0 %v1605_v1, %s2924_s11  ;;  %v3579_v1 = vld [vmem:[%s3553_s27 + $0x28] sm:$0xff]  ;;  %v1695_v3 = vld [vmem:[%s3797_s7] sm:$0xff] }
 0x4ae   : > { %v1696_v4 = vld [vmem:[%s3797_s7 + $0x8] sm:$0xff] }
 0x4af   : > { %v2505_v6 = vpop.f32.mrb[16].mxu0  ;;  %1645 = vrot.lane.b32.xlu1 %v1606_v5, %s2924_s11 }
 0x4b0   : > { %v2506_v36 = vpop.f32.mrb[17].mxu0 }
 0x4b1   : > { %v2507_v7 = vadd.f32 %v2506_v36, %v2505_v6  ;;  %v2508_v8 = vpop.f32.mrb[18].mxu0  ;;  %v2691_v6 = vpack.c.bf16 %v1696_v4, %v1695_v3 }
 0x4b2   : > { %v2509_v10 = vpop.f32.mrb[19].mxu0 }
 0x4b3   : > { %v1607_v11 = vmul.f32 %v2507_v7, %v1562_v9  ;;  %v2510_v37 = vadd.f32 %v2509_v10, %v2508_v8  ;;  %2692 = vmatprep.subr.bf16.mxu1 %v2691_v6  ;;  %v3592_v8 = vld [vmem:[%s3553_s27 + $0x30] sm:$0xff]  ;;  %v3595_v10 = vld [vmem:[%s3553_s27 + $0x38] sm:$0xff] }
 0x4b5   : > { %v1608_v39 = vmul.f32 %v2510_v37, %v1567_v12  ;;  %1647 = vrot.lane.b32.xlu0 %v1607_v11, %s2924_s11 }
 0x4b7   : > { %v2511_v13 = vpop.f32.mrb[20].mxu0  ;;  %1649 = vrot.lane.b32.xlu1 %v1608_v39, %s2924_s11  ;;  %v3602_v39 = vld [vmem:[%s3553_s27 + $0x40] sm:$0xff] }
 0x4b8   : > { %v2512_v42 = vpop.f32.mrb[21].mxu0 }
 0x4b9   : > { %v2513_v43 = vadd.f32 %v2512_v42, %v2511_v13  ;;  %v2514_v14 = vpop.f32.mrb[22].mxu0  ;;  %v3605_v42 = vld [vmem:[%s3553_s27 + $0x48] sm:$0xff] }
 0x4ba   : > { %v2515_v22 = vpop.f32.mrb[23].mxu0 }
 0x4bb   : > { %v1609_v23 = vmul.f32 %v2513_v43, %v1572_v15  ;;  %v2516_v30 = vadd.f32 %v2515_v22, %v2514_v14  ;;  %v3612_v22 = vld [vmem:[%s3553_s27 + $0x50] sm:$0xff] }
 0x4bd   : > { %v1610_v46 = vmul.f32 %v2516_v30, %v1577_v44  ;;  %1651 = vrot.lane.b32.xlu0 %v1609_v23, %s2924_s11  ;;  %v3615_v30 = vld [vmem:[%s3553_s27 + $0x58] sm:$0xff] }
 0x4bf   : > { %v2517_v48 = vpop.f32.mrb[24].mxu0  ;;  %1653 = vrot.lane.b32.xlu1 %v1610_v46, %s2924_s11 }
 0x4c0   : > { %v2518_v49 = vpop.f32.mrb[25].mxu0 }
 0x4c1   : > { %v2519_v33 = vadd.f32 %v2518_v49, %v2517_v48  ;;  %v2520_v51 = vpop.f32.mrb[26].mxu0  ;;  %v3622_v49 = vld [vmem:[%s3553_s27 + $0x60] sm:$0xff] }
 0x4c2   : > { %v2521_v52 = vpop.f32.mrb[27].mxu0 }
 0x4c3   : > { %v1611_v38 = vmul.f32 %v2519_v33, %v1582_v40  ;;  %v2522_v53 = vadd.f32 %v2521_v52, %v2520_v51  ;;  %v3625_v51 = vld [vmem:[%s3553_s27 + $0x68] sm:$0xff] }
 0x4c5   : > { %v1612_v16 = vmul.f32 %v2522_v53, %v1587_v41  ;;  %1655 = vrot.lane.b32.xlu0 %v1611_v38, %s2924_s11  ;;  %v3632_v53 = vld [vmem:[%s3553_s27 + $0x70] sm:$0xff] }
 0x4c7   : > { %v2523_v34 = vpop.f32.mrb[28].mxu0  ;;  %1657 = vrot.lane.b32.xlu1 %v1612_v16, %s2924_s11 }
 0x4c8   : > { %v2524_v57 = vpop.f32.mrb[29].mxu0 }
 0x4c9   : > { %v2525_v59 = vadd.f32 %v2524_v57, %v2523_v34  ;;  %v2526_v58 = vpop.f32.mrb[30].mxu0  ;;  %v2695_v34 = vpack.c.bf16 %v1698_v28, %v1697_v55 }
 0x4ca   : > { %v2527_v18 = vpop.f32.mrb[31].mxu0 }
 0x4cb   : > { %v1613_v21 = vmul.f32 %v2525_v59, %v1592_v17  ;;  %v2528_v25 = vadd.f32 %v2527_v18, %v2526_v58  ;;  %v1699_v59 = vld [vmem:[%s3797_s7 + $0x20] sm:$0xff]  ;;  %v1700_v58 = vld [vmem:[%s3797_s7 + $0x28] sm:$0xff]  ;;  %v1701_v18 = vld [vmem:[%s3797_s7 + $0x30] sm:$0xff] }
 0x4cc   : > { %v2699_v17 = vpack.c.bf16 %v1700_v58, %v1699_v59 }
 0x4cd   : > { %v1614_v29 = vmul.f32 %v2528_v25, %v1597_v61  ;;  %1659 = vrot.lane.b32.xlu0 %v1613_v21, %s2924_s11  ;;  %v1702_v21 = vld [vmem:[%s3797_s7 + $0x38] sm:$0xff] }
 0x4ce   : > { %v2703_v61 = vpack.c.bf16 %v1702_v21, %v1701_v18 }
 0x4cf   : > { %1661 = vrot.lane.b32.xlu1 %v1614_v29, %s2924_s11 }
 0x507   : > { %v1632_v56 = vpop.permute.xlu0 %1631 }
 0x508   : > { %v1679_v35 = vsub.f32 %v3556_v19, %v1632_v56 }
 0x509   : > { %v1634_v63 = vpop.permute.xlu1 %1633 }
 0x50a   : > { %v1680_v60 = vsub.f32 %v3559_v62, %v1634_v63  ;;  %1723 = vrot.lane.b32.xlu0 %v1679_v35, %s2925_s12 }
 0x50c   : > { %1725 = vrot.lane.b32.xlu1 %v1680_v60, %s2925_s12 }
 0x50f   : > { %v1636_v45 = vpop.permute.xlu0 %1635 }
 0x510   : > { %v1681_v31 = vsub.f32 %v3566_v27, %v1636_v45 }
 0x511   : > { %v1638_v24 = vpop.permute.xlu1 %1637 }
 0x512   : > { %v1682_v0 = vsub.f32 %v3569_v50, %v1638_v24  ;;  %1727 = vrot.lane.b32.xlu0 %v1681_v31, %s2925_s12 }
 0x514   : > { %1729 = vrot.lane.b32.xlu1 %v1682_v0, %s2925_s12 }
 0x517   : > { %v1640_v2 = vpop.permute.xlu0 %1639 }
 0x518   : > { %v1683_v5 = vsub.f32 %v3576_v32, %v1640_v2 }
 0x519   : > { %v1642_v36 = vpop.permute.xlu1 %1641 }
 0x51a   : > { %v1684_v7 = vsub.f32 %v3579_v1, %v1642_v36  ;;  %1731 = vrot.lane.b32.xlu0 %v1683_v5, %s2925_s12 }
 0x51c   : > { %1733 = vrot.lane.b32.xlu1 %v1684_v7, %s2925_s12 }
 0x51f   : > { %v1644_v9 = vpop.permute.xlu0 %1643 }
 0x520   : > { %v1685_v11 = vsub.f32 %v3592_v8, %v1644_v9 }
 0x521   : > { %v1646_v37 = vpop.permute.xlu1 %1645 }
 0x522   : > { %v1686_v12 = vsub.f32 %v3595_v10, %v1646_v37  ;;  %1735 = vrot.lane.b32.xlu0 %v1685_v11, %s2925_s12 }
 0x524   : > { %1737 = vrot.lane.b32.xlu1 %v1686_v12, %s2925_s12 }
 0x527   : > { %v1648_v13 = vpop.permute.xlu0 %1647 }
 0x528   : > { %v1687_v43 = vsub.f32 %v3602_v39, %v1648_v13 }
 0x529   : > { %v1650_v14 = vpop.permute.xlu1 %1649 }
 0x52a   : > { %v1688_v15 = vsub.f32 %v3605_v42, %v1650_v14  ;;  %1739 = vrot.lane.b32.xlu0 %v1687_v43, %s2925_s12 }
 0x52c   : > { %1741 = vrot.lane.b32.xlu1 %v1688_v15, %s2925_s12 }
 0x52f   : > { %v1652_v23 = vpop.permute.xlu0 %1651 }
 0x530   : > { %v1689_v44 = vsub.f32 %v3612_v22, %v1652_v23 }
 0x531   : > { %v1654_v46 = vpop.permute.xlu1 %1653 }
 0x532   : > { %v1690_v48 = vsub.f32 %v3615_v30, %v1654_v46  ;;  %1743 = vrot.lane.b32.xlu0 %v1689_v44, %s2925_s12 }
 0x534   : > { %1745 = vrot.lane.b32.xlu1 %v1690_v48, %s2925_s12 }
 0x537   : > { %v1656_v33 = vpop.permute.xlu0 %1655 }
 0x538   : > { %v1691_v40 = vsub.f32 %v3622_v49, %v1656_v33 }
 0x539   : > { %v1658_v52 = vpop.permute.xlu1 %1657 }
 0x53a   : > { %v1692_v38 = vsub.f32 %v3625_v51, %v1658_v52  ;;  %1747 = vrot.lane.b32.xlu0 %v1691_v40, %s2925_s12 }
 0x53c   : > { %1749 = vrot.lane.b32.xlu1 %v1692_v38, %s2925_s12 }
 0x53f   : > { %v1660_v41 = vpop.permute.xlu0 %1659 }
 0x540   : > { %v1693_v26 = vsub.f32 %v3632_v53, %v1660_v41 }
 0x541   : > { %v1662_v47 = vpop.permute.xlu1 %1661 }
 0x542   : > { %v1694_v16 = vsub.f32 %v3635_v54, %v1662_v47  ;;  %1751 = vrot.lane.b32.xlu0 %v1693_v26, %s2925_s12 }
 0x544   : > { %1753 = vrot.lane.b32.xlu1 %v1694_v16, %s2925_s12 }
 0x57c   : > { %v1724_v20 = vpop.permute.xlu0 %1723 }
 0x57d   : > { %2619 = vmatprep.mubr.msk.f32.mxu1 %vm1755_vm5, %v1724_v20 }
 0x57e   : > { %v1726_v57 = vpop.permute.xlu1 %1725 }
 0x57f   : > { %2620 = vmatmul.mubr.msk.f32.vlgmr.msra.gmra.mrb[0].mxu1 %vm1755_vm5, %v1726_v57 }
 0x580   : > { %2694 = vmatpush3.bf16.msra.mxu1 %v2691_v6 }
 0x581   : > { %2696 = vmatprep.subr.bf16.mxu1 %v2695_v34 }
 0x584   : > { %v1728_v25 = vpop.permute.xlu0 %1727  ;;  %2698 = vmatpush3.bf16.msra.mxu1 %v2695_v34 }
 0x585   : > { %2622 = vmatprep.mubr.msk.f32.mxu1 %vm1755_vm5, %v1728_v25  ;;  %2700 = vmatprep.subr.bf16.mxu1 %v2699_v17 }
 0x586   : > { %v1730_v29 = vpop.permute.xlu1 %1729 }
 0x587   : > { %2623 = vmatmul.mubr.msk.f32.gmra.mrb[2].mxu1 %vm1755_vm5, %v1730_v29 }
 0x588   : > { %2702 = vmatpush3.bf16.msra.mxu1 %v2699_v17 }
 0x589   : > { %2704 = vmatprep.subr.bf16.mxu1 %v2703_v61 }
 0x58c   : > { %v1732_v56 = vpop.permute.xlu0 %1731  ;;  %2706 = vmatpush3.bf16.msra.mxu1 %v2703_v61 }
 0x58d   : > { %2625 = vmatprep.mubr.msk.f32.mxu1 %vm1755_vm5, %v1732_v56 }
 0x58e   : > { %v1734_v35 = vpop.permute.xlu1 %1733 }
 0x58f   : > { %2626 = vmatmul.mubr.msk.f32.gmra.mrb[4].mxu1 %vm1755_vm5, %v1734_v35 }
 0x594   : > { %v1736_v63 = vpop.permute.xlu0 %1735 }
 0x595   : > { %2628 = vmatprep.mubr.msk.f32.mxu1 %vm1755_vm5, %v1736_v63 }
 0x596   : > { %v1738_v60 = vpop.permute.xlu1 %1737 }
 0x597   : > { %2629 = vmatmul.mubr.msk.f32.gmra.mrb[6].mxu1 %vm1755_vm5, %v1738_v60 }
 0x59c   : > { %v1740_v45 = vpop.permute.xlu0 %1739 }
 0x59d   : > { %2631 = vmatprep.mubr.msk.f32.mxu1 %vm1755_vm5, %v1740_v45 }
 0x59e   : > { %v1742_v31 = vpop.permute.xlu1 %1741 }
 0x59f   : > { %2632 = vmatmul.mubr.msk.f32.gmra.mrb[8].mxu1 %vm1755_vm5, %v1742_v31 }
 0x5a4   : > { %v1744_v24 = vpop.permute.xlu0 %1743 }
 0x5a5   : > { %2634 = vmatprep.mubr.msk.f32.mxu1 %vm1755_vm5, %v1744_v24 }
 0x5a6   : > { %v1746_v0 = vpop.permute.xlu1 %1745 }
 0x5a7   : > { %2635 = vmatmul.mubr.msk.f32.gmra.mrb[10].mxu1 %vm1755_vm5, %v1746_v0 }
 0x5ac   : > { %v1748_v2 = vpop.permute.xlu0 %1747 }
 0x5ad   : > { %2637 = vmatprep.mubr.msk.f32.mxu1 %vm1755_vm5, %v1748_v2 }
 0x5ae   : > { %v1750_v3 = vpop.permute.xlu1 %1749 }
 0x5af   : > { %2638 = vmatmul.mubr.msk.f32.gmra.mrb[12].mxu1 %vm1755_vm5, %v1750_v3 }
 0x5b4   : > { %v1752_v4 = vpop.permute.xlu0 %1751 }
 0x5b5   : > { %2640 = vmatprep.mubr.msk.f32.mxu1 %vm1755_vm5, %v1752_v4 }
 0x5b6   : > { %v1754_v5 = vpop.permute.xlu1 %1753 }
 0x5b7   : > { %2641 = vmatmul.mubr.msk.f32.gmra.mrb[14].mxu1 %vm1755_vm5, %v1754_v5 }
 0x5b8   : > { %2659 = vmatprep.mubr.msk.f32.mxu1 %vm1933_vm6, %v3556_v19  ;;  %v2374_v19 = vld [vmem:[%s3799_s9] ss:$0 sm:$0xff] }
 0x5bb   : > { %2660 = vmatmul.mubr.msk.f32.vlgmr.msra.gmra.mrb[0].mxu1 %vm1933_vm6, %v3559_v62 }
 0x5bc   : > { %2662 = vmatprep.mubr.msk.f32.mxu1 %vm1933_vm6, %v3566_v27 }
 0x5bf   : > { %2663 = vmatmul.mubr.msk.f32.gmra.mrb[2].mxu1 %vm1933_vm6, %v3569_v50 }
 0x5c0   : > { %2665 = vmatprep.mubr.msk.f32.mxu1 %vm1933_vm6, %v3576_v32 }
 0x5c3   : > { %2666 = vmatmul.mubr.msk.f32.gmra.mrb[4].mxu1 %vm1933_vm6, %v3579_v1 }
 0x5c4   : > { %2668 = vmatprep.mubr.msk.f32.mxu1 %vm1933_vm6, %v3592_v8 }
 0x5c7   : > { %2669 = vmatmul.mubr.msk.f32.gmra.mrb[6].mxu1 %vm1933_vm6, %v3595_v10 }
 0x5c8   : > { %2671 = vmatprep.mubr.msk.f32.mxu1 %vm1933_vm6, %v3602_v39 }
 0x5cb   : > { %2672 = vmatmul.mubr.msk.f32.gmra.mrb[8].mxu1 %vm1933_vm6, %v3605_v42 }
 0x5cc   : > { %2674 = vmatprep.mubr.msk.f32.mxu1 %vm1933_vm6, %v3612_v22 }
 0x5cf   : > { %2675 = vmatmul.mubr.msk.f32.gmra.mrb[10].mxu1 %vm1933_vm6, %v3615_v30 }
 0x5d0   : > { %2677 = vmatprep.mubr.msk.f32.mxu1 %vm1933_vm6, %v3622_v49 }
 0x5d3   : > { %2678 = vmatmul.mubr.msk.f32.gmra.mrb[12].mxu1 %vm1933_vm6, %v3625_v51 }
 0x5d4   : > { %2680 = vmatprep.mubr.msk.f32.mxu1 %vm1933_vm6, %v3632_v53 }
 0x5d7   : > { %2681 = vmatmul.mubr.msk.f32.gmra.mrb[14].mxu1 %vm1933_vm6, %v3635_v54 }
 0x68e   : > { %v2661_v62 = vpop.f32.mrb[0].mxu1 }
 0x68f   : > { %v2135_v27 = vadd.f32 %v2661_v62, %v2374_v19  ;;  %v2048_v50 = vpop.f32.mrb[1].mxu1 }
 0x690   : > { %v2134_v32 = vadd.f32 %v2374_v19, %v2048_v50 }
 0x691   : > { %v2151_v1 = vmax.f32 %v2135_v27, 0.0 }
 0x692   : > { %v2150_v6 = vmax.f32 %v2134_v32, 0.0  ;;  %v2664_v36 = vpop.f32.mrb[2].mxu1 }
 0x693   : > { %2167 = vst [vmem:[%s3113_s15 + $0x8] sm:$0xff] %v2151_v1  ;;  %v2137_v7 = vadd.f32 %v2664_v36, %v2374_v19  ;;  %v2058_v8 = vpop.f32.mrb[3].mxu1 }
 0x694   : > { %2166 = vst [vmem:[%s3113_s15] sm:$0xff] %v2150_v6  ;;  %v2136_v9 = vadd.f32 %v2374_v19, %v2058_v8 }
 0x695   : > { %v2153_v10 = vmax.f32 %v2137_v7, 0.0 }
 0x696   : > { %v2152_v11 = vmax.f32 %v2136_v9, 0.0  ;;  %v2667_v37 = vpop.f32.mrb[4].mxu1 }
 0x697   : > { %2169 = vst [vmem:[%s3113_s15 + $0x18] sm:$0xff] %v2153_v10  ;;  %v2139_v12 = vadd.f32 %v2667_v37, %v2374_v19  ;;  %v2068_v39 = vpop.f32.mrb[5].mxu1 }
 0x698   : > { %2168 = vst [vmem:[%s3113_s15 + $0x10] sm:$0xff] %v2152_v11  ;;  %v2138_v13 = vadd.f32 %v2374_v19, %v2068_v39 }
 0x699   : > { %v2155_v42 = vmax.f32 %v2139_v12, 0.0 }
 0x69a   : > { %v2154_v43 = vmax.f32 %v2138_v13, 0.0  ;;  %v2670_v14 = vpop.f32.mrb[6].mxu1 }
 0x69b   : > { %2171 = vst [vmem:[%s3113_s15 + $0x28] sm:$0xff] %v2155_v42  ;;  %v2141_v15 = vadd.f32 %v2670_v14, %v2374_v19  ;;  %v2078_v22 = vpop.f32.mrb[7].mxu1 }
 0x69c   : > { %2170 = vst [vmem:[%s3113_s15 + $0x20] sm:$0xff] %v2154_v43  ;;  %v2140_v23 = vadd.f32 %v2374_v19, %v2078_v22 }
 0x69d   : > { %v2157_v30 = vmax.f32 %v2141_v15, 0.0 }
 0x69e   : > { %v2156_v44 = vmax.f32 %v2140_v23, 0.0  ;;  %v2673_v46 = vpop.f32.mrb[8].mxu1 }
 0x69f   : > { %2173 = vst [vmem:[%s3113_s15 + $0x38] sm:$0xff] %v2157_v30  ;;  %v2143_v48 = vadd.f32 %v2673_v46, %v2374_v19  ;;  %v2088_v49 = vpop.f32.mrb[9].mxu1 }
 0x6a0   : > { %2172 = vst [vmem:[%s3113_s15 + $0x30] sm:$0xff] %v2156_v44  ;;  %v2142_v33 = vadd.f32 %v2374_v19, %v2088_v49 }
 0x6a1   : > { %v2159_v51 = vmax.f32 %v2143_v48, 0.0 }
 0x6a2   : > { %v2158_v40 = vmax.f32 %v2142_v33, 0.0  ;;  %v2676_v52 = vpop.f32.mrb[10].mxu1 }
 0x6a3   : > { %2175 = vst [vmem:[%s3113_s15 + $0x48] sm:$0xff] %v2159_v51  ;;  %v2145_v38 = vadd.f32 %v2676_v52, %v2374_v19  ;;  %v2098_v53 = vpop.f32.mrb[11].mxu1 }
 0x6a4   : > { %2174 = vst [vmem:[%s3113_s15 + $0x40] sm:$0xff] %v2158_v40  ;;  %v2144_v41 = vadd.f32 %v2374_v19, %v2098_v53 }
 0x6a5   : > { %v2161_v54 = vmax.f32 %v2145_v38, 0.0 }
 0x6a6   : > { %v2160_v26 = vmax.f32 %v2144_v41, 0.0  ;;  %v2679_v47 = vpop.f32.mrb[12].mxu1 }
 0x6a7   : > { %2177 = vst [vmem:[%s3113_s15 + $0x58] sm:$0xff] %v2161_v54  ;;  %v2147_v16 = vadd.f32 %v2679_v47, %v2374_v19  ;;  %v2108_v55 = vpop.f32.mrb[13].mxu1 }
 0x6a8   : > { %2176 = vst [vmem:[%s3113_s15 + $0x50] sm:$0xff] %v2160_v26  ;;  %v2146_v28 = vadd.f32 %v2374_v19, %v2108_v55 }
 0x6a9   : > { %v2163_v20 = vmax.f32 %v2147_v16, 0.0 }
 0x6aa   : > { %v2162_v34 = vmax.f32 %v2146_v28, 0.0  ;;  %v2682_v57 = vpop.f32.mrb[14].mxu1 }
 0x6ab   : > { %2179 = vst [vmem:[%s3113_s15 + $0x68] sm:$0xff] %v2163_v20  ;;  %v2149_v59 = vadd.f32 %v2682_v57, %v2374_v19  ;;  %v2118_v58 = vpop.f32.mrb[15].mxu1 }
 0x6ac   : > { %2178 = vst [vmem:[%s3113_s15 + $0x60] sm:$0xff] %v2162_v34  ;;  %v2148_v17 = vadd.f32 %v2374_v19, %v2118_v58 }
 0x6ad   : > { %v2165_v18 = vmax.f32 %v2149_v59, 0.0 }
 0x6ae   : > { %v2164_v21 = vmax.f32 %v2148_v17, 0.0 }
 0x6af   : > { %2181 = vst [vmem:[%s3113_s15 + $0x78] sm:$0xff] %v2165_v18 }
 0x6b0   : > { %2180 = vst [vmem:[%s3113_s15 + $0x70] sm:$0xff] %v2164_v21 }
 0x6b1 PF: > { %p2190_p9 = scmp.eq.s32.totalorder %s2906_s17, 2  ;;  %s2198_s24 = sshll.u32 %s3113_s15, 4  ;;  %s3729_s24 = int_to_ptr.vmem [resolvable:$true] %s2198_s24 }
 0x6b2   : > { %s3824_s13 = sld [smem:[#allocation17_spill]]  ;;  %s3826_s18 = sand.u32 1, %s2894_s14  }
 0x6b3   : > { %s3852_s16 = smov (!%p2190_p9, %s2902_s16), 0  ;;  %s3738_s19 = scalar_lea.sflag [#allocation6], %s3826_s18 }
 0x6b4   : > { %s2381_s28 = sshll.u32 %s3852_s16, 11  ;;  %s2824_s20 = scalar_lea.vmem %s3729_s24, 2048 }
 0x6b5   : > { %p2825_p10 = scmp.ne.s32.totalorder %s3729_s24, %s2824_s20  ;;  %s2926_s17 = smov [#allocation5]  }
 0x6b6   : > { %s2828_s15 = sshll.u32 %s2926_s17, 4  ;;  %s2829_s15 = int_to_ptr.vmem [resolvable:$false] %s2828_s15 }
 0x6b7   : > { %p2826_p11 = pnand %p2825_p10, %p3039_p7  ;;  %s2830_s22 = scalar_lea.vmem %s2829_s15, 4096 }
 0x6b8   : > { %s3825_s23 = smov %s3824_s13  ;;  %s3734_s25 = scalar_lea.hbm %s3824_s13, %s2381_s28 }
 0x6b9   : > { %p2827_p12 = pneg %p2826_p11  ;;  %p2831_p13 = scmp.lt.s32.totalorder %s3729_s24, %s2829_s15 }
 0x6ba   : > { %p2832_p0 = scmp.lt.s32.totalorder %s2830_s22, %s2824_s20 }
 0x6bc   : > { %p2833_p1 = por %p2832_p0, %p2831_p13 }
 0x6be   : > { %p2834_p2 = pnand %p2833_p1, %p2827_p12 }
 0x6c0   : > { %2837 = shalt.err (!%p2834_p2)
}
 0x6c1   : > { %s2838_s16 = scalar_lea.hbm %s3734_s25, 2048  ;;  %s2842_s12 = scalar_lea.hbm %s3825_s23, 4096 }
 0x6c2   : > { %p2839_p3 = scmp.ne.s32.totalorder %s3734_s25, %s2838_s16  ;;  %p2843_p6 = scmp.lt.u32.totalorder %s3734_s25, %s3825_s23 }
 0x6c3   : > { %p2844_p9 = scmp.lt.u32.totalorder %s2842_s12, %s2838_s16  ;;  %p2846_p11 = scmp.lt.u32.totalorder %s2838_s16, %s3734_s25 }
 0x6c4   : > { %p2840_p4 = pnand %p2839_p3, %p3039_p7 }
 0x6c5   : > { %p2845_p10 = por %p2844_p9, %p2843_p6 }
 0x6c6   : > { %p2841_p5 = pneg %p2840_p4 }
 0x6c7   : > { %p2847_p12 = por %p2846_p11, %p2845_p10 }
 0x6c9   : > { %p2848_p13 = pnand %p2847_p12, %p2841_p5 }
 0x6cb   : > { %2851 = shalt.err (!%p2848_p13)
}
 0x6cc   : > { %s2927_s28 = smov 128   ;;  %s2928_s30 = smov 8  }
 0x6cd   : > { %2739 = dma.vmem_to_hbm [thread:$0]  (%p3039_p7), %s3729_s24, 2048, %s3734_s25, %s3738_s19, %s2927_s28, %s2927_s28, %s2928_s30  }
 0x6ce PF: > { %s3827_s11 = sld [smem:[#allocation12_spill]]  ;;  %s3828_s13 = sld [smem:[#allocation8_spill]] }
 0x6d4   : > { %p2745_p0 = scmp.ge.s32.totalorder %s3827_s11, 2  ;;  %s2213_s20 = sand.u32 1, %s3828_s13  }
 0x6d5   : > { %s2214_s17 = scalar_lea.sflag [#allocation6], %s2213_s20 }
 0x6d6   : > { %p2742_p1 = pnand %p2745_p0, %p3043_p8 }
 0x6d8   : > { %2885 = dma.done.wait (!%p2742_p1), %s2214_s17, 2048  }
 0x6d9   : > { %2887 = vsyncadd (!%p2742_p1), %s2214_s17, 4294965248  ;;  %s23_s20 = sadd.s32 1, %s3827_s11   ;;  %s3830_s15 = sld [smem:[#allocation9_spill]] }
 0x6da   : > { %p20_p2 = scmp.ge.s32.totalorder %s23_s20, 8   ;;  %s3831_s22 = sld [smem:[#allocation16_spill]] }
 0x6db   : > { %s3832_s16 = sld [smem:[#allocation10_spill]]  ;;  %s3833_s17 = sld [smem:[#allocation11_spill]] }
 0x6dc   : > { %s3834_s18 = sld [smem:[#allocation13_spill]]  ;;  %s3835_s19 = sld [smem:[#allocation14_spill]] }
 0x6dd   : > { %s3836_s13 = smov %s2894_s14  ;;  %22 = sbr.rel (!%p20_p2) target bundleno = 7 (0x7), region = 118 }
 0x6df   : > { %s3837_s14 = smov %s3830_s15 }
 0x6e0   : > { %s3838_s15 = smov %s3831_s22 }
 0x6e4   :  { %2219 = vsyncpa [#allocation6], 1 }
 0x6e5   :  { %2221 = vsyncpa [#allocation6 + $0x1], 1 }

</bundles_post_ra>
